<compile_context>
chip_gen: v5e
topology: v5e:2x2
jax: 0.10.0
libtpu: 0.0.40
codegen_flags: <defaults>
</compile_context>

<pallas_src>
import functools
import math

import jax
import jax.numpy as jnp
from jax.experimental import pallas as pl
from jax.experimental.pallas import tpu as pltpu


# --------------------------------------------------------------------------
# kernel
# --------------------------------------------------------------------------
def _int_pow(x, n):
    """x**n for small integer n via binary exponentiation (pure VALU)."""
    result = None
    base = x
    while n > 0:
        if n & 1:
            result = base if result is None else result * base
        n >>= 1
        if n:
            base = base * base
    return result


def _negdist_kernel(y_ref, ideal_ref, seg_ref, out_ref, *, p, square, k,
                    elem_dtype, mxu_dtype):
    # y_ref:     (tile_r, L)  L = k*M lanes, k original rows packed per lane row
    # ideal_ref: (1, L)       ideal point tiled k times (stored in elem_dtype)
    # seg_ref:   (L, k)       0/1 segment matrix (stored in mxu_dtype)
    # out_ref:   (tile_r, k)  -dist (or -dist^2) per original row
    y = y_ref[...].astype(elem_dtype)
    ideal = ideal_ref[...]                      # already elem_dtype
    diff = y - ideal

    if p == 2.0:
        e = diff * diff
    elif p == 1.0:
        e = jnp.abs(diff)
    elif float(p).is_integer() and 3.0 <= p <= 8.0:
        # Small-integer p: VALU multiplies only (avoids the EUP log+exp pow).
        ip = int(p)
        if ip % 2 == 0:
            e = _int_pow(diff * diff, ip // 2)
        else:
            e = jnp.abs(diff) * _int_pow(diff * diff, (ip - 1) // 2)
    else:
        # General fractional p: log+exp per element on the single EUP slot.
        e = jnp.abs(diff) ** p

    if k == 1:
        # Plain per-row reduction over the feature (lane) axis, f32 accumulate.
        acc = jnp.sum(e.astype(jnp.float32), axis=-1, keepdims=True)
    else:
        # Segmented per-row reduction as a matmul with a 0/1 segment matrix on
        # the otherwise-idle MXU; f32 accumulation, k-lane-dense result.
        acc = jnp.dot(e.astype(mxu_dtype), seg_ref[...],
                      preferred_element_type=jnp.float32)

    # acc[g, j] = sum_m |Y[row, m] - ideal[m]|^p  for original row g*k + j.
    if p == 2.0:
        res = -acc if square else -jnp.sqrt(acc)      # skip sqrt when squared
    elif p == 1.0:
        res = -(acc * acc) if square else -acc
    elif p == 4.0:
        r = jnp.sqrt(acc)
        res = -r if square else -jnp.sqrt(r)
    else:
        res = -(acc ** (2.0 / p)) if square else -(acc ** (1.0 / p))
    out_ref[...] = res.astype(out_ref.dtype)


# --------------------------------------------------------------------------
# wrapper helpers
# --------------------------------------------------------------------------
def _chip_config():
    """Generation-aware tiling / dtype policy (safe defaults if unknown)."""
    kind = ""
    try:
        kind = (jax.devices()[0].device_kind or "").lower()
    except Exception:
        pass
    if "v7" in kind:
        # 64 MiB VMEM per TC, 3.2 TB/s HBM, 2 TensorCores per chip.
        return dict(budget=6 << 20, vmem_limit=48 << 20, min_tiles=2,
                    bf16_valu=True)
    if "v5 lite" in kind or "v5e" in kind or "v5litepod" in kind:
        # 128 MiB VMEM, no native bf16 VPU -> do elementwise work in f32.
        return dict(budget=10 << 20, vmem_limit=64 << 20, min_tiles=1,
                    bf16_valu=False)
    # v6e / default: 128 MiB VMEM, bf16 VPU.
    return dict(budget=10 << 20, vmem_limit=64 << 20, min_tiles=1,
                bf16_valu=True)


_SEG_ELEMS_CAP = 1 << 20     # seg matrix (L, k) capped at ~4 MiB f32 / 2 MiB bf16


def _choose_packing(m: int, rows: int):
    """Return (k, pad_rows): rows packed per lane row and row padding needed.

    Requirements: (k*m) % 128 == 0 (lane-dense input block).  Preference:
    k as close to 128 as possible (lane-dense output block), k | rows (no
    padding), seg matrix under the VMEM cap.
    """
    if m % 128 == 0:
        return 1, 0                      # input already lane-dense; plain sum
    k0 = 128 // math.gcd(m, 128)         # smallest k with (k*m) % 128 == 0
    valid = [k for k in range(k0, 129, k0) if k * k * m <= _SEG_ELEMS_CAP]
    if not valid:
        return 1, 0
    divisors = [k for k in valid if rows % k == 0]
    if divisors:
        return max(divisors), 0          # no padding, densest output block
    # No exact divisor: pad a handful of rows (< k <= 128) of zeros.  NOTE:
    # the concat this implies copies Y once through HBM; only taken when no
    # k > 1 divides `rows` exactly.
    k = max(valid)
    return k, (-rows) % k


def _choose_tile(rows_g: int, lane_width: int, itemsize: int,
                 budget: int, min_tiles: int) -> int:
    """Biggest row tile whose (lane-padded) VMEM block stays within `budget`,
    split into >= min_tiles tiles (so v7x's two TensorCores both get work)."""
    lanes_padded = ((lane_width + 127) // 128) * 128
    bytes_per_row = max(1, lanes_padded * itemsize)
    tile = max(8, (budget // bytes_per_row) // 8 * 8)
    if min_tiles > 1 and rows_g > 8:
        cap = max(8, (rows_g // min_tiles) // 8 * 8)
        tile = min(tile, cap)
    if tile >= rows_g:
        return rows_g                    # single full-extent block
    return tile


# --------------------------------------------------------------------------
# public entry point
# --------------------------------------------------------------------------
def neg_dist(Y, ideal_point, *, p=2.0, square=False, fast_reduce=None):
    """Equivalent of NegDist.forward(Y): -||Y - ideal||_p over the last dim.

    fast_reduce: None (auto) / bool.  When True, the segmented-sum MXU
    operands are cast to bf16 (f32 accumulation).  Auto = True for bf16
    inputs, False for f32 inputs (preserves f32 reference numerics).
    """
    Y = jnp.asarray(Y)
    ideal_point = jnp.asarray(ideal_point)
    if Y.ndim == 1:
        Y = Y[None, :]
    p = float(p)
    square = bool(square)

    batch_shape = Y.shape[:-2]
    n, m = int(Y.shape[-2]), int(Y.shape[-1])

    y2 = Y.reshape(-1, m)
    rows = int(y2.shape[0])
    in_dtype = Y.dtype
    itemsize = jnp.dtype(in_dtype).itemsize

    cfg = _chip_config()

    # --- lane packing (metadata-only reshape unless a tiny row pad is needed)
    k, pad_rows = _choose_packing(m, rows)
    if pad_rows:
        y2 = jnp.concatenate(
            [y2, jnp.zeros((pad_rows, m), dtype=in_dtype)], axis=0)
    rows_p = rows + pad_rows
    L = k * m
    rows_g = rows_p // k
    y_packed = y2.reshape(rows_g, L)

    # --- generation / dtype policy ------------------------------------------
    is_bf16_in = in_dtype == jnp.dtype(jnp.bfloat16)
    elem_dtype = (jnp.bfloat16
                  if (is_bf16_in and cfg["bf16_valu"] and p in (1.0, 2.0))
                  else jnp.float32)
    if fast_reduce is None:
        fast_reduce = is_bf16_in
    mxu_dtype = jnp.bfloat16 if (fast_reduce and k > 1) else jnp.float32

    # --- big auto-sized row tiles, cdiv grid ---------------------------------
    tile_r = _choose_tile(rows_g, L, itemsize, cfg["budget"], cfg["min_tiles"])
    num_tiles = -(-rows_g // tile_r)
    g_pad = num_tiles * tile_r

    # Resident blocks pre-stored in their compute dtypes (no per-step recast).
    ideal_row = jnp.tile(ideal_point.reshape(1, m), (1, k)).astype(elem_dtype)
    # seg[l, j] = 1 iff lane l belongs to packed row j.
    seg = (jnp.arange(L, dtype=jnp.int32)[:, None] // m ==
           jnp.arange(k, dtype=jnp.int32)[None, :]).astype(mxu_dtype)

    needs_root = not (p == 1.0 or (p == 2.0 and square))
    mxu_flops = 2 * rows_p * m * k if k > 1 else 0
    cost = pl.CostEstimate(
        flops=3 * rows_p * m + 2 * rows_p + mxu_flops,
        transcendentals=rows_p if needs_root else 0,
        bytes_accessed=(rows_p * m * itemsize + rows_p * itemsize
                        + L * jnp.dtype(elem_dtype).itemsize
                        + L * k * jnp.dtype(mxu_dtype).itemsize),
    )

    kernel = functools.partial(
        _negdist_kernel, p=p, square=square, k=k,
        elem_dtype=elem_dtype, mxu_dtype=mxu_dtype)

    out = pl.pallas_call(
        kernel,
        out_shape=jax.ShapeDtypeStruct((g_pad, k), in_dtype),
        grid=(num_tiles,),
        in_specs=[
            pl.BlockSpec((tile_r, L), lambda i: (i, 0)),   # packed row tile
            pl.BlockSpec((1, L), lambda i: (0, 0)),        # ideal (resident)
            pl.BlockSpec((L, k), lambda i: (0, 0)),        # seg (resident)
        ],
        out_specs=pl.BlockSpec((tile_r, k), lambda i: (i, 0)),
        compiler_params=pltpu.CompilerParams(
            dimension_semantics=("parallel",),
            vmem_limit_bytes=cfg["vmem_limit"],
        ),
        cost_estimate=cost,
    )(y_packed, ideal_row, seg)

    # Drop padded original rows and garbage tail-block rows, restore shape.
    out = out.reshape(-1)[:rows]
    return out.reshape(batch_shape + (n,))


# --------------------------------------------------------------------------
# self-test
# --------------------------------------------------------------------------
if __name__ == "__main__":
    key = jax.random.PRNGKey(0)
    k1, k2, k3 = jax.random.split(key, 3)

    # f32 case: batch=2, n=64 candidate points, m=32 objective dims.  Integer-
    # valued (clipped) data keeps the kernel-vs-reference comparison exact
    # regardless of MXU accumulation mode.
    B, N, M = 2, 64, 32
    Y = jnp.clip(jnp.round(jax.random.normal(k1, (B, N, M)) * 2.0), -6.0, 6.0)
    ideal = jnp.clip(jnp.round(jax.random.normal(k2, (M,)) * 2.0), -6.0, 6.0)

    result = neg_dist(Y, ideal, p=2.0, square=False)
    jax.block_until_ready(result)

    diff = Y - ideal[None, None, :]
    ref = -jnp.sqrt(jnp.sum(diff * diff, axis=-1))
    assert result.shape == (B, N), result.shape
    assert jnp.allclose(result, ref, atol=1e-5, rtol=1e-5), (
        float(jnp.max(jnp.abs(result - ref))))

    # p=1, square=True path (VALU-only per-element work, no root).
    result1 = neg_dist(Y, ideal, p=1, square=True)
    ref1 = -jnp.square(jnp.sum(jnp.abs(diff), axis=-1))
    assert jnp.allclose(result1, ref1, atol=1e-4, rtol=1e-5)

    # bf16 path with a non-power-of-two feature width: exercises the
    # generalized lane packing (k*m multiple of 128) and the bf16 MXU
    # segmented reduction.  Integer data keeps it near-exact; tolerance
    # covers the bf16 output rounding.
    M2 = 40
    Yb = jnp.clip(jnp.round(jax.random.normal(k3, (B, N, M2)) * 2.0),
                  -6.0, 6.0).astype(jnp.bfloat16)
    idealb = jnp.zeros((M2,), jnp.bfloat16)
    resultb = neg_dist(Yb, idealb, p=2.0, square=True)
    db = Yb.astype(jnp.float32)
    refb = -jnp.sum(db * db, axis=-1)
    assert jnp.allclose(resultb.astype(jnp.float32), refb,
                        rtol=2e-2, atol=1e-2)

    print("KERNEL_OK")
</pallas_src>

<mosaic_0001>
module attributes {stable_mosaic.version = 11 : i64} {
  func.func @_negdist_kernel(%arg0: i32, %arg1: memref<1x4096xf32, #tpu.memory_space<vmem>>, %arg2: memref<1x4096xf32, #tpu.memory_space<vmem>>, %arg3: memref<4096x128xf32, #tpu.memory_space<vmem>>, %arg4: memref<1x128xf32, #tpu.memory_space<vmem>>) attributes {dimension_semantics = [#tpu.dimension_semantics<parallel>], iteration_bounds = array<i64: 1>, scalar_prefetch = 0 : i64, scratch_operands = 0 : i64, tpu.core_type = #tpu.core_type<tc>, window_params = [{transform_indices = @transform_0, window_bounds = array<i64: 1, 4096>}, {pipeline_mode = #tpu.pipeline_mode<synchronous>, transform_indices = @transform_1, window_bounds = array<i64: 1, 4096>}, {pipeline_mode = #tpu.pipeline_mode<synchronous>, transform_indices = @transform_2, window_bounds = array<i64: 4096, 128>}, {transform_indices = @transform_3, window_bounds = array<i64: 1, 128>}]} {
    %c0 = arith.constant 0 : index
    %c0_0 = arith.constant 0 : index
    %0 = vector.load %arg1[%c0, %c0_0] : memref<1x4096xf32, #tpu.memory_space<vmem>>, vector<1x4096xf32>
    %c0_1 = arith.constant 0 : index
    %c0_2 = arith.constant 0 : index
    %1 = vector.load %arg2[%c0_1, %c0_2] : memref<1x4096xf32, #tpu.memory_space<vmem>>, vector<1x4096xf32>
    %2 = arith.subf %0, %1 : vector<1x4096xf32>
    %3 = arith.mulf %2, %2 : vector<1x4096xf32>
    %c0_3 = arith.constant 0 : index
    %c0_4 = arith.constant 0 : index
    %4 = vector.load %arg3[%c0_3, %c0_4] : memref<4096x128xf32, #tpu.memory_space<vmem>>, vector<4096x128xf32>
    %cst = arith.constant dense<0.000000e+00> : vector<1x128xf32>
    %5 = tpu.matmul %3, %4, %cst {dimension_numbers = #tpu.dot_dimension_numbers<[1], [0], [0], [1], [0, 0, 1, 1], [], []>} : vector<1x4096xf32>, vector<4096x128xf32>, vector<1x128xf32> -> vector<1x128xf32>
    %6 = math.sqrt %5 : vector<1x128xf32>
    %cst_5 = arith.constant 0.000000e+00 : f32
    %7 = vector.broadcast %cst_5 : f32 to vector<1x128xf32>
    %8 = arith.subf %7, %6 : vector<1x128xf32>
    %c0_6 = arith.constant 0 : index
    %c0_7 = arith.constant 0 : index
    %9 = vector.load %arg4[%c0_6, %c0_7] : memref<1x128xf32, #tpu.memory_space<vmem>>, vector<1x128xf32>
    tpu.vector_store %arg4[%c0_6, %c0_7], %8 {strides = array<i32>} : memref<1x128xf32, #tpu.memory_space<vmem>>, vector<1x128xf32>,
    return
  }
  func.func @transform_0(%arg0: i32) -> (i32, i32) {
    %c0_i32 = arith.constant 0 : i32
    %c0_i32_0 = arith.constant 0 : i32
    return %arg0, %c0_i32 : i32, i32
  }
  func.func @transform_1(%arg0: i32) -> (i32, i32) {
    %c0_i32 = arith.constant 0 : i32
    %c0_i32_0 = arith.constant 0 : i32
    %c0_i32_1 = arith.constant 0 : i32
    return %c0_i32, %c0_i32_0 : i32, i32
  }
  func.func @transform_2(%arg0: i32) -> (i32, i32) {
    %c0_i32 = arith.constant 0 : i32
    %c0_i32_0 = arith.constant 0 : i32
    %c0_i32_1 = arith.constant 0 : i32
    return %c0_i32, %c0_i32_0 : i32, i32
  }
  func.func @transform_3(%arg0: i32) -> (i32, i32) {
    %c0_i32 = arith.constant 0 : i32
    %c0_i32_0 = arith.constant 0 : i32
    return %arg0, %c0_i32 : i32, i32
  }
}

</mosaic_0001>

<bundles_post_ra>
// kernel: tpu_custom_call.1
= control target key start
LH: loop header
LB: loop body
LE: loop exit
PB: predicated region body
PF: predicated region fallthrough
CT: control target
= control target key end

     0   :  { %8 = vsyncpa [#allocation3], 0  ;;  %s1514_s0 = inlined_call_operand.hbm [shape: f32[1,4096], index: 0, kind: input, shape index: {}]   ;;  %s1515_s1 = inlined_call_operand.hbm [shape: f32[1,4096], index: 1, kind: input, shape index: {}]   ;;  %s1516_s2 = inlined_call_operand.hbm [shape: f32[4096,128], index: 2, kind: input, shape index: {}]   ;;  %s1517_s3 = inlined_call_operand.hbm [shape: f32[1,128], index: 3, kind: output, shape index: {}]  }
   0x1   :  { %9 = vsyncpa [#allocation6], 0  ;;  %s27_s14 = sshll.u32 %s1515_s1, 4  ;;  %s28_s14 = int_to_ptr.hbm [resolvable:$true] %s27_s14 }
   0x2   :  { %10 = vsyncpa [#allocation4], 0  ;;  %s1436_s15 = smov [#allocation5]   ;;  %s16_s19 = sshll.u32 %s1514_s0, 4  ;;  %s17_s19 = int_to_ptr.hbm [resolvable:$true] %s16_s19 }
   0x3   :  { %s29_s16 = sshll.u32 %s1436_s15, 4  ;;  %s1437_s20 = smov [#allocation2]   ;;  %s30_s16 = int_to_ptr.vmem [resolvable:$true] %s29_s16 }
   0x4   :  { %32 = dma.hbm_to_vmem [thread:$0]  %s28_s14, 512, %s30_s16, [#allocation6]  }
   0x5   :  { %s18_s21 = sshll.u32 %s1437_s20, 4  ;;  %s37_s24 = sshll.u32 %s1516_s2, 4  ;;  %s19_s21 = int_to_ptr.vmem [resolvable:$true] %s18_s21  ;;  %s38_s24 = int_to_ptr.hbm [resolvable:$true] %s37_s24 }
   0x6   :  { %21 = dma.hbm_to_vmem [thread:$0]  %s17_s19, 512, %s19_s21, [#allocation3]  }
   0x7   :  { %s1438_s1 = smov [#allocation7]   ;;  %s1439_s26 = smov 128  }
   0x8   :  { %s39_s25 = sshll.u32 %s1438_s1, 4  ;;  %s1440_s27 = smov 8   ;;  %s40_s25 = int_to_ptr.vmem [resolvable:$true] %s39_s25 }
   0x9   :  { %45 = dma.hbm_to_vmem [thread:$0]  %s38_s24, 65536, %s40_s25, [#allocation6], %s1439_s26, %s1439_s26, %s1440_s27  }
   0xa   :  { %1430 = dma.done.wait [#allocation3], 512  }
   0xb   :  { %1431 = vsyncadd [#allocation3], 4294966784 }
   0xc   :  { %1432 = dma.done.wait [#allocation6], 66048  }
   0xd   :  { %1433 = vsyncadd [#allocation6], 4294901248  ;;  %v89_v0 = vld [vmem:[#allocation7 + $0x78] sm:$0xff]  ;;  %v88_v2 = vld [vmem:[#allocation7 + $0x70] sm:$0xff]  ;;  %s1441_s0 = smov [#allocation8]   ;;  %s1315_s30 = sshll.u32 %s1517_s3, 4  ;;  %s1316_s30 = int_to_ptr.hbm [resolvable:$true] %s1315_s30 }
   0xe   :  { %v121_v1 = vld [vmem:[#allocation7 + $0x178] sm:$0xff]  ;;  %654 = vmatpush.msra.mxu0 %v89_v0  ;;  %v120_v4 = vld [vmem:[#allocation7 + $0x170] sm:$0xff]  ;;  %v87_v6 = vld [vmem:[#allocation7 + $0x68] sm:$0xff]  ;;  %s1313_s2 = sshll.u32 %s1441_s0, 4  ;;  %s1314_s2 = int_to_ptr.vmem [resolvable:$true] %s1313_s2 }
   0xf   :  { %694 = vmatpush.msra.mxu2 %v121_v1  ;;  %v105_v3 = vld [vmem:[#allocation7 + $0xf8] sm:$0xff]  ;;  %v104_v7 = vld [vmem:[#allocation7 + $0xf0] sm:$0xff]  ;;  %v119_v8 = vld [vmem:[#allocation7 + $0x168] sm:$0xff] }
  0x10   :  { %v137_v5 = vld [vmem:[#allocation7 + $0x1f8] sm:$0xff]  ;;  %674 = vmatpush.msra.mxu1 %v105_v3  ;;  %655 = vmatpush.msra.mxu0 %v88_v2  ;;  %v136_v9 = vld [vmem:[#allocation7 + $0x1f0] sm:$0xff]  ;;  %v103_v10 = vld [vmem:[#allocation7 + $0xe8] sm:$0xff] }
  0x11   :  { %714 = vmatpush.msra.mxu3 %v137_v5  ;;  %695 = vmatpush.msra.mxu2 %v120_v4  ;;  %v86_v11 = vld [vmem:[#allocation7 + $0x60] sm:$0xff]  ;;  %v135_v13 = vld [vmem:[#allocation7 + $0x1e8] sm:$0xff]  ;;  %v85_v16 = vld [vmem:[#allocation7 + $0x58] sm:$0xff] }
  0x12   :  { %675 = vmatpush.msra.mxu1 %v104_v7  ;;  %v118_v12 = vld [vmem:[#allocation7 + $0x160] sm:$0xff]  ;;  %656 = vmatpush.msra.mxu0 %v87_v6  ;;  %v117_v17 = vld [vmem:[#allocation7 + $0x158] sm:$0xff]  ;;  %v84_v20 = vld [vmem:[#allocation7 + $0x50] sm:$0xff] }
  0x13   :  { %715 = vmatpush.msra.mxu3 %v136_v9  ;;  %696 = vmatpush.msra.mxu2 %v119_v8  ;;  %v102_v14 = vld [vmem:[#allocation7 + $0xe0] sm:$0xff]  ;;  %v101_v18 = vld [vmem:[#allocation7 + $0xd8] sm:$0xff]  ;;  %v116_v21 = vld [vmem:[#allocation7 + $0x150] sm:$0xff] }
  0x14   :  { %v134_v15 = vld [vmem:[#allocation7 + $0x1e0] sm:$0xff]  ;;  %676 = vmatpush.msra.mxu1 %v103_v10  ;;  %657 = vmatpush.msra.mxu0 %v86_v11  ;;  %v133_v19 = vld [vmem:[#allocation7 + $0x1d8] sm:$0xff]  ;;  %v100_v22 = vld [vmem:[#allocation7 + $0xd0] sm:$0xff] }
  0x15   :  { %716 = vmatpush.msra.mxu3 %v135_v13  ;;  %697 = vmatpush.msra.mxu2 %v118_v12  ;;  %v132_v23 = vld [vmem:[#allocation7 + $0x1d0] sm:$0xff]  ;;  %v83_v24 = vld [vmem:[#allocation7 + $0x48] sm:$0xff]  ;;  %v82_v28 = vld [vmem:[#allocation7 + $0x40] sm:$0xff] }
  0x16   :  { %677 = vmatpush.msra.mxu1 %v102_v14  ;;  %658 = vmatpush.msra.mxu0 %v85_v16  ;;  %v115_v25 = vld [vmem:[#allocation7 + $0x148] sm:$0xff]  ;;  %v114_v29 = vld [vmem:[#allocation7 + $0x140] sm:$0xff]  ;;  %v81_v32 = vld [vmem:[#allocation7 + $0x38] sm:$0xff] }
  0x17   :  { %717 = vmatpush.msra.mxu3 %v134_v15  ;;  %698 = vmatpush.msra.mxu2 %v117_v17  ;;  %v99_v26 = vld [vmem:[#allocation7 + $0xc8] sm:$0xff]  ;;  %v98_v30 = vld [vmem:[#allocation7 + $0xc0] sm:$0xff]  ;;  %v113_v33 = vld [vmem:[#allocation7 + $0x138] sm:$0xff] }
  0x18   :  { %678 = vmatpush.msra.mxu1 %v101_v18  ;;  %659 = vmatpush.msra.mxu0 %v84_v20  ;;  %v131_v27 = vld [vmem:[#allocation7 + $0x1c8] sm:$0xff]  ;;  %v130_v31 = vld [vmem:[#allocation7 + $0x1c0] sm:$0xff]  ;;  %v97_v34 = vld [vmem:[#allocation7 + $0xb8] sm:$0xff] }
  0x19   :  { %718 = vmatpush.msra.mxu3 %v133_v19  ;;  %699 = vmatpush.msra.mxu2 %v116_v21  ;;  %v129_v35 = vld [vmem:[#allocation7 + $0x1b8] sm:$0xff]  ;;  %v80_v36 = vld [vmem:[#allocation7 + $0x30] sm:$0xff]  ;;  %v79_v40 = vld [vmem:[#allocation7 + $0x28] sm:$0xff] }
  0x1a   :  { %679 = vmatpush.msra.mxu1 %v100_v22  ;;  %660 = vmatpush.msra.mxu0 %v83_v24  ;;  %v112_v37 = vld [vmem:[#allocation7 + $0x130] sm:$0xff]  ;;  %v111_v41 = vld [vmem:[#allocation7 + $0x128] sm:$0xff]  ;;  %v78_v44 = vld [vmem:[#allocation7 + $0x20] sm:$0xff] }
  0x1b   :  { %719 = vmatpush.msra.mxu3 %v132_v23  ;;  %700 = vmatpush.msra.mxu2 %v115_v25  ;;  %v96_v38 = vld [vmem:[#allocation7 + $0xb0] sm:$0xff]  ;;  %v95_v42 = vld [vmem:[#allocation7 + $0xa8] sm:$0xff]  ;;  %v110_v45 = vld [vmem:[#allocation7 + $0x120] sm:$0xff] }
  0x1c   :  { %680 = vmatpush.msra.mxu1 %v99_v26  ;;  %661 = vmatpush.msra.mxu0 %v82_v28  ;;  %v128_v39 = vld [vmem:[#allocation7 + $0x1b0] sm:$0xff]  ;;  %v127_v43 = vld [vmem:[#allocation7 + $0x1a8] sm:$0xff]  ;;  %v94_v46 = vld [vmem:[#allocation7 + $0xa0] sm:$0xff] }
  0x1d   :  { %720 = vmatpush.msra.mxu3 %v131_v27  ;;  %701 = vmatpush.msra.mxu2 %v114_v29  ;;  %v126_v47 = vld [vmem:[#allocation7 + $0x1a0] sm:$0xff]  ;;  %v77_v48 = vld [vmem:[#allocation7 + $0x18] sm:$0xff]  ;;  %v76_v52 = vld [vmem:[#allocation7 + $0x10] sm:$0xff] }
  0x1e   :  { %681 = vmatpush.msra.mxu1 %v98_v30  ;;  %662 = vmatpush.msra.mxu0 %v81_v32  ;;  %v109_v49 = vld [vmem:[#allocation7 + $0x118] sm:$0xff]  ;;  %v108_v53 = vld [vmem:[#allocation7 + $0x110] sm:$0xff]  ;;  %v75_v56 = vld [vmem:[#allocation7 + $0x8] sm:$0xff] }
  0x1f   :  { %721 = vmatpush.msra.mxu3 %v130_v31  ;;  %702 = vmatpush.msra.mxu2 %v113_v33  ;;  %v93_v50 = vld [vmem:[#allocation7 + $0x98] sm:$0xff]  ;;  %v92_v54 = vld [vmem:[#allocation7 + $0x90] sm:$0xff]  ;;  %v107_v57 = vld [vmem:[#allocation7 + $0x108] sm:$0xff] }
  0x20   :  { %682 = vmatpush.msra.mxu1 %v97_v34  ;;  %663 = vmatpush.msra.mxu0 %v80_v36  ;;  %v125_v51 = vld [vmem:[#allocation7 + $0x198] sm:$0xff]  ;;  %v124_v55 = vld [vmem:[#allocation7 + $0x190] sm:$0xff]  ;;  %v91_v58 = vld [vmem:[#allocation7 + $0x88] sm:$0xff] }
  0x21   :  { %722 = vmatpush.msra.mxu3 %v129_v35  ;;  %703 = vmatpush.msra.mxu2 %v112_v37  ;;  %v123_v59 = vld [vmem:[#allocation7 + $0x188] sm:$0xff]  ;;  %v74_v60 = vld [vmem:[#allocation7] sm:$0xff]  ;;  %v153_v62 = vld [vmem:[#allocation7 + $0x278] sm:$0xff] }
  0x22   :  { %683 = vmatpush.msra.mxu1 %v96_v38  ;;  %664 = vmatpush.msra.mxu0 %v79_v40  ;;  %v106_v61 = vld [vmem:[#allocation7 + $0x100] sm:$0xff]  ;;  %v185_v63 = vld [vmem:[#allocation7 + $0x378] sm:$0xff]  ;;  %v152_v2 = vld [vmem:[#allocation7 + $0x270] sm:$0xff] }
  0x23   :  { %723 = vmatpush.msra.mxu3 %v128_v39  ;;  %704 = vmatpush.msra.mxu2 %v111_v41  ;;  %v90_v0 = vld [vmem:[#allocation7 + $0x80] sm:$0xff]  ;;  %v169_v3 = vld [vmem:[#allocation7 + $0x2f8] sm:$0xff]  ;;  %v184_v4 = vld [vmem:[#allocation7 + $0x370] sm:$0xff] }
  0x24   :  { %684 = vmatpush.msra.mxu1 %v95_v42  ;;  %665 = vmatpush.msra.mxu0 %v78_v44  ;;  %v122_v1 = vld [vmem:[#allocation7 + $0x180] sm:$0xff]  ;;  %v201_v5 = vld [vmem:[#allocation7 + $0x3f8] sm:$0xff]  ;;  %v151_v6 = vld [vmem:[#allocation7 + $0x268] sm:$0xff] }
  0x25   :  { %724 = vmatpush.msra.mxu3 %v127_v43  ;;  %705 = vmatpush.msra.mxu2 %v110_v45  ;;  %v168_v7 = vld [vmem:[#allocation7 + $0x2f0] sm:$0xff]  ;;  %v183_v8 = vld [vmem:[#allocation7 + $0x368] sm:$0xff]  ;;  %v150_v10 = vld [vmem:[#allocation7 + $0x260] sm:$0xff] }
  0x26   :  { %685 = vmatpush.msra.mxu1 %v94_v46  ;;  %666 = vmatpush.msra.mxu0 %v77_v48  ;;  %v200_v9 = vld [vmem:[#allocation7 + $0x3f0] sm:$0xff]  ;;  %v167_v11 = vld [vmem:[#allocation7 + $0x2e8] sm:$0xff]  ;;  %v182_v12 = vld [vmem:[#allocation7 + $0x360] sm:$0xff] }
  0x27   :  { %725 = vmatpush.msra.mxu3 %v126_v47  ;;  %706 = vmatpush.msra.mxu2 %v109_v49  ;;  %v199_v13 = vld [vmem:[#allocation7 + $0x3e8] sm:$0xff]  ;;  %v149_v14 = vld [vmem:[#allocation7 + $0x258] sm:$0xff]  ;;  %v166_v15 = vld [vmem:[#allocation7 + $0x2e0] sm:$0xff] }
  0x28   :  { %686 = vmatpush.msra.mxu1 %v93_v50  ;;  %667 = vmatpush.msra.mxu0 %v76_v52  ;;  %v181_v16 = vld [vmem:[#allocation7 + $0x358] sm:$0xff]  ;;  %v198_v17 = vld [vmem:[#allocation7 + $0x3e0] sm:$0xff]  ;;  %v148_v18 = vld [vmem:[#allocation7 + $0x250] sm:$0xff] }
  0x29   :  { %726 = vmatpush.msra.mxu3 %v125_v51  ;;  %707 = vmatpush.msra.mxu2 %v108_v53  ;;  %v165_v19 = vld [vmem:[#allocation7 + $0x2d8] sm:$0xff]  ;;  %v180_v20 = vld [vmem:[#allocation7 + $0x350] sm:$0xff]  ;;  %v147_v22 = vld [vmem:[#allocation7 + $0x248] sm:$0xff] }
  0x2a   :  { %687 = vmatpush.msra.mxu1 %v92_v54  ;;  %668 = vmatpush.msra.mxu0 %v75_v56  ;;  %v197_v21 = vld [vmem:[#allocation7 + $0x3d8] sm:$0xff]  ;;  %v164_v23 = vld [vmem:[#allocation7 + $0x2d0] sm:$0xff]  ;;  %v179_v24 = vld [vmem:[#allocation7 + $0x348] sm:$0xff] }
  0x2b   :  { %727 = vmatpush.msra.mxu3 %v124_v55  ;;  %708 = vmatpush.msra.mxu2 %v107_v57  ;;  %v196_v25 = vld [vmem:[#allocation7 + $0x3d0] sm:$0xff]  ;;  %v146_v26 = vld [vmem:[#allocation7 + $0x240] sm:$0xff]  ;;  %v163_v27 = vld [vmem:[#allocation7 + $0x2c8] sm:$0xff] }
  0x2c   :  { %688 = vmatpush.msra.mxu1 %v91_v58  ;;  %669 = vmatpush.msra.mxu0 %v74_v60  ;;  %v178_v28 = vld [vmem:[#allocation7 + $0x340] sm:$0xff]  ;;  %v195_v29 = vld [vmem:[#allocation7 + $0x3c8] sm:$0xff]  ;;  %v145_v30 = vld [vmem:[#allocation7 + $0x238] sm:$0xff] }
  0x2d   :  { %728 = vmatpush.msra.mxu3 %v123_v59  ;;  %709 = vmatpush.msra.mxu2 %v106_v61  ;;  %v162_v31 = vld [vmem:[#allocation7 + $0x2c0] sm:$0xff]  ;;  %v177_v32 = vld [vmem:[#allocation7 + $0x338] sm:$0xff]  ;;  %v144_v34 = vld [vmem:[#allocation7 + $0x230] sm:$0xff] }
  0x2e   :  { %734 = vmatpush.msrb.mxu0 %v153_v62  ;;  %689 = vmatpush.msra.mxu1 %v90_v0  ;;  %v194_v33 = vld [vmem:[#allocation7 + $0x3c0] sm:$0xff]  ;;  %v161_v35 = vld [vmem:[#allocation7 + $0x2b8] sm:$0xff]  ;;  %v176_v38 = vld [vmem:[#allocation7 + $0x330] sm:$0xff] }
  0x2f   :  { %774 = vmatpush.msrb.mxu2 %v185_v63  ;;  %729 = vmatpush.msra.mxu3 %v122_v1  ;;  %v58_v36 = vld [vmem:[#allocation2] sm:$0xff]  ;;  %v193_v39 = vld [vmem:[#allocation7 + $0x3b8] sm:$0xff]  ;;  %v143_v40 = vld [vmem:[#allocation7 + $0x228] sm:$0xff] }
  0x30   :  { %735 = vmatpush.msrb.mxu0 %v152_v2  ;;  %754 = vmatpush.msrb.mxu1 %v169_v3  ;;  %v62_v37 = vld [vmem:[#allocation5] sm:$0xff]  ;;  %v160_v41 = vld [vmem:[#allocation7 + $0x2b0] sm:$0xff]  ;;  %v175_v42 = vld [vmem:[#allocation7 + $0x328] sm:$0xff] }
  0x31   :  { %775 = vmatpush.msrb.mxu2 %v184_v4  ;;  %794 = vmatpush.msrb.mxu3 %v201_v5  ;;  %v192_v43 = vld [vmem:[#allocation7 + $0x3b0] sm:$0xff]  ;;  %v66_v44 = vsub.f32 %v58_v36, %v62_v37  ;;  %v142_v45 = vld [vmem:[#allocation7 + $0x220] sm:$0xff]  ;;  %v159_v46 = vld [vmem:[#allocation7 + $0x2a8] sm:$0xff] }
  0x32   :  { %736 = vmatpush.msrb.mxu0 %v151_v6  ;;  %755 = vmatpush.msrb.mxu1 %v168_v7  ;;  %v174_v47 = vld [vmem:[#allocation7 + $0x320] sm:$0xff]  ;;  %v191_v48 = vld [vmem:[#allocation7 + $0x3a8] sm:$0xff]  ;;  %v141_v49 = vld [vmem:[#allocation7 + $0x218] sm:$0xff] }
  0x33   :  { %776 = vmatpush.msrb.mxu2 %v183_v8  ;;  %795 = vmatpush.msrb.mxu3 %v200_v9  ;;  %v158_v50 = vld [vmem:[#allocation7 + $0x2a0] sm:$0xff]  ;;  %v173_v51 = vld [vmem:[#allocation7 + $0x318] sm:$0xff]  ;;  %v1471_v53 = vmul.f32 %v66_v44, %v66_v44  ;;  %v140_v54 = vld [vmem:[#allocation7 + $0x210] sm:$0xff] }
  0x34   :  { %737 = vmatpush.msrb.mxu0 %v150_v10  ;;  %756 = vmatpush.msrb.mxu1 %v167_v11  ;;  %v190_v52 = vld [vmem:[#allocation7 + $0x3a0] sm:$0xff]  ;;  %v157_v55 = vld [vmem:[#allocation7 + $0x298] sm:$0xff]  ;;  %v172_v56 = vld [vmem:[#allocation7 + $0x310] sm:$0xff] }
  0x35   :  { %777 = vmatpush.msrb.mxu2 %v182_v12  ;;  %796 = vmatpush.msrb.mxu3 %v199_v13  ;;  %v189_v57 = vld [vmem:[#allocation7 + $0x398] sm:$0xff]  ;;  %v139_v58 = vld [vmem:[#allocation7 + $0x208] sm:$0xff]  ;;  %v156_v59 = vld [vmem:[#allocation7 + $0x290] sm:$0xff]  ;;  %v592_v62 = vperm.slane %v1471_v53, 2  ;;  %v590_v2 = vperm.slane %v1471_v53, 0  ;;  %v593_v4 = vperm.slane %v1471_v53, 3 }
  0x36   :  { %738 = vmatpush.msrb.mxu0 %v149_v14  ;;  %757 = vmatpush.msrb.mxu1 %v166_v15  ;;  %v171_v60 = vld [vmem:[#allocation7 + $0x308] sm:$0xff]  ;;  %v188_v61 = vld [vmem:[#allocation7 + $0x390] sm:$0xff]  ;;  %v138_v63 = vld [vmem:[#allocation7 + $0x200] sm:$0xff]  ;;  %v591_v8 = vperm.slane %v1471_v53, 1 }
  0x37   :  { %778 = vmatpush.msrb.mxu2 %v181_v16  ;;  %797 = vmatpush.msrb.mxu3 %v198_v17  ;;  %v155_v0 = vld [vmem:[#allocation7 + $0x288] sm:$0xff]  ;;  %v170_v1 = vld [vmem:[#allocation7 + $0x300] sm:$0xff]  ;;  %v217_v5 = vld [vmem:[#allocation7 + $0x478] sm:$0xff] }
  0x38   :  { %739 = vmatpush.msrb.mxu0 %v148_v18  ;;  %758 = vmatpush.msrb.mxu1 %v165_v19  ;;  %v187_v3 = vld [vmem:[#allocation7 + $0x388] sm:$0xff]  ;;  %v249_v6 = vld [vmem:[#allocation7 + $0x578] sm:$0xff]  ;;  %v154_v7 = vld [vmem:[#allocation7 + $0x280] sm:$0xff]  ;;  %v596_v18 = vperm.slane %v1471_v53, 6 }
  0x39   :  { %779 = vmatpush.msrb.mxu2 %v180_v20  ;;  %798 = vmatpush.msrb.mxu3 %v197_v21  ;;  %v186_v9 = vld [vmem:[#allocation7 + $0x380] sm:$0xff]  ;;  %v216_v10 = vld [vmem:[#allocation7 + $0x470] sm:$0xff]  ;;  %v233_v11 = vld [vmem:[#allocation7 + $0x4f8] sm:$0xff] }
  0x3a   :  { %740 = vmatpush.msrb.mxu0 %v147_v22  ;;  %759 = vmatpush.msrb.mxu1 %v164_v23  ;;  %v248_v12 = vld [vmem:[#allocation7 + $0x570] sm:$0xff]  ;;  %v265_v13 = vld [vmem:[#allocation7 + $0x5f8] sm:$0xff]  ;;  %v215_v14 = vld [vmem:[#allocation7 + $0x468] sm:$0xff]  ;;  %v594_v22 = vperm.slane %v1471_v53, 4 }
  0x3b   :  { %780 = vmatpush.msrb.mxu2 %v179_v24  ;;  %799 = vmatpush.msrb.mxu3 %v196_v25  ;;  %v232_v15 = vld [vmem:[#allocation7 + $0x4f0] sm:$0xff]  ;;  %v247_v16 = vld [vmem:[#allocation7 + $0x568] sm:$0xff]  ;;  %v214_v19 = vld [vmem:[#allocation7 + $0x460] sm:$0xff]  ;;  %v597_v24 = vperm.slane %v1471_v53, 7 }
  0x3c   :  { %741 = vmatpush.msrb.mxu0 %v146_v26  ;;  %760 = vmatpush.msrb.mxu1 %v163_v27  ;;  %v264_v17 = vld [vmem:[#allocation7 + $0x5f0] sm:$0xff]  ;;  %v231_v20 = vld [vmem:[#allocation7 + $0x4e8] sm:$0xff]  ;;  %v246_v21 = vld [vmem:[#allocation7 + $0x560] sm:$0xff] }
  0x3d   :  { %781 = vmatpush.msrb.mxu2 %v178_v28  ;;  %800 = vmatpush.msrb.mxu3 %v195_v29  ;;  %v263_v23 = vld [vmem:[#allocation7 + $0x5e8] sm:$0xff]  ;;  %v213_v25 = vld [vmem:[#allocation7 + $0x458] sm:$0xff]  ;;  %v230_v26 = vld [vmem:[#allocation7 + $0x4e0] sm:$0xff]  ;;  %v595_v28 = vperm.slane %v1471_v53, 5 }
  0x3e   :  { %742 = vmatpush.msrb.mxu0 %v145_v30  ;;  %761 = vmatpush.msrb.mxu1 %v162_v31  ;;  %v245_v27 = vld [vmem:[#allocation7 + $0x558] sm:$0xff]  ;;  %v262_v29 = vld [vmem:[#allocation7 + $0x5e0] sm:$0xff]  ;;  %v212_v30 = vld [vmem:[#allocation7 + $0x450] sm:$0xff] }
  0x3f   :  { %782 = vmatpush.msrb.mxu2 %v177_v32  ;;  %801 = vmatpush.msrb.mxu3 %v194_v33  ;;  %v229_v31 = vld [vmem:[#allocation7 + $0x4d8] sm:$0xff]  ;;  %v244_v32 = vld [vmem:[#allocation7 + $0x550] sm:$0xff]  ;;  %v243_v36 = vld [vmem:[#allocation7 + $0x548] sm:$0xff] }
  0x40   :  { %743 = vmatpush.msrb.mxu0 %v144_v34  ;;  %762 = vmatpush.msrb.mxu1 %v161_v35  ;;  %v261_v33 = vld [vmem:[#allocation7 + $0x5d8] sm:$0xff]  ;;  %v211_v34 = vld [vmem:[#allocation7 + $0x448] sm:$0xff]  ;;  %v228_v35 = vld [vmem:[#allocation7 + $0x4d0] sm:$0xff] }
  0x41   :  { %783 = vmatpush.msrb.mxu2 %v176_v38  ;;  %802 = vmatpush.msrb.mxu3 %v193_v39  ;;  %v260_v37 = vld [vmem:[#allocation7 + $0x5d0] sm:$0xff]  ;;  %v210_v38 = vld [vmem:[#allocation7 + $0x440] sm:$0xff]  ;;  %v227_v39 = vld [vmem:[#allocation7 + $0x4c8] sm:$0xff] }
  0x42   :  { %744 = vmatpush.msrb.mxu0 %v143_v40  ;;  %763 = vmatpush.msrb.mxu1 %v160_v41  ;;  %v242_v40 = vld [vmem:[#allocation7 + $0x540] sm:$0xff]  ;;  %v259_v41 = vld [vmem:[#allocation7 + $0x5c8] sm:$0xff]  ;;  %v241_v44 = vld [vmem:[#allocation7 + $0x538] sm:$0xff] }
  0x43   :  { %784 = vmatpush.msrb.mxu2 %v175_v42  ;;  %803 = vmatpush.msrb.mxu3 %v192_v43  ;;  %v209_v42 = vld [vmem:[#allocation7 + $0x438] sm:$0xff]  ;;  %v226_v43 = vld [vmem:[#allocation7 + $0x4c0] sm:$0xff]  ;;  %v63_v53 = vld [vmem:[#allocation5 + $0x8] sm:$0xff] }
  0x44   :  { %745 = vmatpush.msrb.mxu0 %v142_v45  ;;  %764 = vmatpush.msrb.mxu1 %v159_v46  ;;  %v258_v45 = vld [vmem:[#allocation7 + $0x5c0] sm:$0xff]  ;;  %v208_v46 = vld [vmem:[#allocation7 + $0x430] sm:$0xff] }
  0x45   :  { %785 = vmatpush.msrb.mxu2 %v174_v47  ;;  %804 = vmatpush.msrb.mxu3 %v191_v48  ;;  %v225_v47 = vld [vmem:[#allocation7 + $0x4b8] sm:$0xff]  ;;  %v240_v48 = vld [vmem:[#allocation7 + $0x530] sm:$0xff] }
  0x46   :  { %746 = vmatpush.msrb.mxu0 %v141_v49  ;;  %765 = vmatpush.msrb.mxu1 %v158_v50  ;;  %v257_v49 = vld [vmem:[#allocation7 + $0x5b8] sm:$0xff]  ;;  %v207_v50 = vld [vmem:[#allocation7 + $0x428] sm:$0xff] }
  0x47   :  { %786 = vmatpush.msrb.mxu2 %v173_v51  ;;  %805 = vmatpush.msrb.mxu3 %v190_v52  ;;  %v224_v51 = vld [vmem:[#allocation7 + $0x4b0] sm:$0xff]  ;;  %v59_v52 = vld [vmem:[#allocation2 + $0x8] sm:$0xff] }
  0x48   :  { %747 = vmatpush.msrb.mxu0 %v140_v54  ;;  %766 = vmatpush.msrb.mxu1 %v157_v55  ;;  %v239_v54 = vld [vmem:[#allocation7 + $0x528] sm:$0xff]  ;;  %v256_v55 = vld [vmem:[#allocation7 + $0x5b0] sm:$0xff] }
  0x49   :  { %787 = vmatpush.msrb.mxu2 %v172_v56  ;;  %806 = vmatpush.msrb.mxu3 %v189_v57  ;;  %v206_v56 = vld [vmem:[#allocation7 + $0x420] sm:$0xff]  ;;  %v223_v57 = vld [vmem:[#allocation7 + $0x4a8] sm:$0xff] }
  0x4a   :  { %748 = vmatpush.msrb.mxu0 %v139_v58  ;;  %767 = vmatpush.msrb.mxu1 %v156_v59  ;;  %v238_v58 = vld [vmem:[#allocation7 + $0x520] sm:$0xff]  ;;  %v255_v59 = vld [vmem:[#allocation7 + $0x5a8] sm:$0xff] }
  0x4b   :  { %788 = vmatpush.msrb.mxu2 %v171_v60  ;;  %807 = vmatpush.msrb.mxu3 %v188_v61  ;;  %v67_v60 = vsub.f32 %v59_v52, %v63_v53  ;;  %v205_v61 = vld [vmem:[#allocation7 + $0x418] sm:$0xff]  ;;  %v322_v53 = vld [vmem:[#allocation7 + $0x7c0] sm:$0xff] }
  0x4c   :  { %710 = vmatmul.f32.vlgmr.msra.gmra.mxu2 %v592_v62  ;;  %749 = vmatpush.msrb.mxu0 %v138_v63  ;;  %v222_v62 = vld [vmem:[#allocation7 + $0x4a0] sm:$0xff]  ;;  %v237_v63 = vld [vmem:[#allocation7 + $0x518] sm:$0xff] }
  0x4d   :  { %768 = vmatpush.msrb.mxu1 %v155_v0  ;;  %789 = vmatpush.msrb.mxu2 %v170_v1  ;;  %v254_v0 = vld [vmem:[#allocation7 + $0x5a0] sm:$0xff]  ;;  %v204_v1 = vld [vmem:[#allocation7 + $0x410] sm:$0xff]  ;;  %v305_v52 = vld [vmem:[#allocation7 + $0x738] sm:$0xff] }
  0x4e   :  { %808 = vmatpush.msrb.mxu3 %v187_v3  ;;  %670 = vmatmul.f32.vlgmr.msra.gmra.mxu0 %v590_v2  ;;  %v221_v2 = vld [vmem:[#allocation7 + $0x498] sm:$0xff]  ;;  %v236_v3 = vld [vmem:[#allocation7 + $0x510] sm:$0xff] }
  0x4f   :  { %730 = vmatmul.f32.vlgmr.msra.gmra.mxu3 %v593_v4  ;;  %814 = vmatpush.msra.mxu0 %v217_v5  ;;  %v253_v4 = vld [vmem:[#allocation7 + $0x598] sm:$0xff]  ;;  %v1481_v5 = vmul.f32 %v67_v60, %v67_v60  ;;  %v303_v60 = vld [vmem:[#allocation7 + $0x728] sm:$0xff] }
  0x50   :  { %854 = vmatpush.msra.mxu2 %v249_v6  ;;  %769 = vmatpush.msrb.mxu1 %v154_v7  ;;  %v203_v6 = vld [vmem:[#allocation7 + $0x408] sm:$0xff]  ;;  %v220_v7 = vld [vmem:[#allocation7 + $0x490] sm:$0xff] }
  0x51   :  { %809 = vmatpush.msrb.mxu3 %v186_v9  ;;  %690 = vmatmul.f32.vlgmr.msra.gmra.mxu1 %v591_v8  ;;  %v235_v8 = vld [vmem:[#allocation7 + $0x508] sm:$0xff]  ;;  %v252_v9 = vld [vmem:[#allocation7 + $0x590] sm:$0xff] }
  0x52   :  { %815 = vmatpush.msra.mxu0 %v216_v10  ;;  %834 = vmatpush.msra.mxu1 %v233_v11  ;;  %v202_v10 = vld [vmem:[#allocation7 + $0x400] sm:$0xff]  ;;  %v219_v11 = vld [vmem:[#allocation7 + $0x488] sm:$0xff] }
  0x53   :  { %855 = vmatpush.msra.mxu2 %v248_v12  ;;  %874 = vmatpush.msra.mxu3 %v265_v13  ;;  %v234_v12 = vld [vmem:[#allocation7 + $0x500] sm:$0xff]  ;;  %v251_v13 = vld [vmem:[#allocation7 + $0x588] sm:$0xff] }
  0x54   :  { %816 = vmatpush.msra.mxu0 %v215_v14  ;;  %835 = vmatpush.msra.mxu1 %v232_v15  ;;  %v598_v14 = vperm.slane %v1481_v5, 0  ;;  %v600_v15 = vperm.slane %v1481_v5, 2 }
  0x55   :  { %856 = vmatpush.msra.mxu2 %v247_v16  ;;  %875 = vmatpush.msra.mxu3 %v264_v17  ;;  %v281_v16 = vld [vmem:[#allocation7 + $0x678] sm:$0xff] }
  0x56   :  { %790 = vmatmul.f32.vlgmr.msrb.gmra.mxu2 %v596_v18  ;;  %817 = vmatpush.msra.mxu0 %v214_v19  ;;  %v313_v17 = vld [vmem:[#allocation7 + $0x778] sm:$0xff]  ;;  %v218_v18 = vld [vmem:[#allocation7 + $0x480] sm:$0xff] }
  0x57   :  { %836 = vmatpush.msra.mxu1 %v231_v20  ;;  %857 = vmatpush.msra.mxu2 %v246_v21  ;;  %v250_v19 = vld [vmem:[#allocation7 + $0x580] sm:$0xff]  ;;  %v599_v20 = vperm.slane %v1481_v5, 1  ;;  %v601_v21 = vperm.slane %v1481_v5, 3 }
  0x58   :  { %876 = vmatpush.msra.mxu3 %v263_v23  ;;  %750 = vmatmul.f32.vlgmr.msrb.gmra.mxu0 %v594_v22  ;;  %v280_v22 = vld [vmem:[#allocation7 + $0x670] sm:$0xff]  ;;  %v297_v23 = vld [vmem:[#allocation7 + $0x6f8] sm:$0xff] }
  0x59   :  { %810 = vmatmul.f32.vlgmr.msrb.gmra.mxu3 %v597_v24  ;;  %818 = vmatpush.msra.mxu0 %v213_v25  ;;  %v312_v24 = vld [vmem:[#allocation7 + $0x770] sm:$0xff]  ;;  %v329_v25 = vld [vmem:[#allocation7 + $0x7f8] sm:$0xff] }
  0x5a   :  { %837 = vmatpush.msra.mxu1 %v230_v26  ;;  %858 = vmatpush.msra.mxu2 %v245_v27  ;;  %v279_v26 = vld [vmem:[#allocation7 + $0x668] sm:$0xff]  ;;  %v296_v27 = vld [vmem:[#allocation7 + $0x6f0] sm:$0xff] }
  0x5b   :  { %877 = vmatpush.msra.mxu3 %v262_v29  ;;  %770 = vmatmul.f32.vlgmr.msrb.gmra.mxu1 %v595_v28  ;;  %v311_v28 = vld [vmem:[#allocation7 + $0x768] sm:$0xff]  ;;  %v328_v29 = vld [vmem:[#allocation7 + $0x7f0] sm:$0xff] }
  0x5c   :  { %819 = vmatpush.msra.mxu0 %v212_v30  ;;  %838 = vmatpush.msra.mxu1 %v229_v31  ;;  %v278_v30 = vld [vmem:[#allocation7 + $0x660] sm:$0xff]  ;;  %v295_v31 = vld [vmem:[#allocation7 + $0x6e8] sm:$0xff] }
  0x5d   :  { %859 = vmatpush.msra.mxu2 %v244_v32  ;;  %878 = vmatpush.msra.mxu3 %v261_v33  ;;  %v310_v32 = vld [vmem:[#allocation7 + $0x760] sm:$0xff]  ;;  %v327_v33 = vld [vmem:[#allocation7 + $0x7e8] sm:$0xff] }
  0x5e   :  { %820 = vmatpush.msra.mxu0 %v211_v34  ;;  %839 = vmatpush.msra.mxu1 %v228_v35  ;;  %v277_v34 = vld [vmem:[#allocation7 + $0x658] sm:$0xff]  ;;  %v294_v35 = vld [vmem:[#allocation7 + $0x6e0] sm:$0xff] }
  0x5f   :  { %860 = vmatpush.msra.mxu2 %v243_v36  ;;  %879 = vmatpush.msra.mxu3 %v260_v37  ;;  %v309_v36 = vld [vmem:[#allocation7 + $0x758] sm:$0xff]  ;;  %v326_v37 = vld [vmem:[#allocation7 + $0x7e0] sm:$0xff] }
  0x60   :  { %821 = vmatpush.msra.mxu0 %v210_v38  ;;  %840 = vmatpush.msra.mxu1 %v227_v39  ;;  %v276_v38 = vld [vmem:[#allocation7 + $0x650] sm:$0xff]  ;;  %v293_v39 = vld [vmem:[#allocation7 + $0x6d8] sm:$0xff] }
  0x61   :  { %861 = vmatpush.msra.mxu2 %v242_v40  ;;  %880 = vmatpush.msra.mxu3 %v259_v41  ;;  %v308_v40 = vld [vmem:[#allocation7 + $0x750] sm:$0xff]  ;;  %v325_v41 = vld [vmem:[#allocation7 + $0x7d8] sm:$0xff] }
  0x62   :  { %822 = vmatpush.msra.mxu0 %v209_v42  ;;  %841 = vmatpush.msra.mxu1 %v226_v43  ;;  %v275_v42 = vld [vmem:[#allocation7 + $0x648] sm:$0xff]  ;;  %v292_v43 = vld [vmem:[#allocation7 + $0x6d0] sm:$0xff] }
  0x63   :  { %862 = vmatpush.msra.mxu2 %v241_v44  ;;  %881 = vmatpush.msra.mxu3 %v258_v45  ;;  %v307_v44 = vld [vmem:[#allocation7 + $0x748] sm:$0xff]  ;;  %v324_v45 = vld [vmem:[#allocation7 + $0x7d0] sm:$0xff] }
  0x64   :  { %823 = vmatpush.msra.mxu0 %v208_v46  ;;  %842 = vmatpush.msra.mxu1 %v225_v47  ;;  %v274_v46 = vld [vmem:[#allocation7 + $0x640] sm:$0xff]  ;;  %v291_v47 = vld [vmem:[#allocation7 + $0x6c8] sm:$0xff] }
  0x65   :  { %863 = vmatpush.msra.mxu2 %v240_v48  ;;  %882 = vmatpush.msra.mxu3 %v257_v49  ;;  %v306_v48 = vld [vmem:[#allocation7 + $0x740] sm:$0xff]  ;;  %v323_v49 = vld [vmem:[#allocation7 + $0x7c8] sm:$0xff] }
  0x66   :  { %824 = vmatpush.msra.mxu0 %v207_v50  ;;  %843 = vmatpush.msra.mxu1 %v224_v51  ;;  %v273_v50 = vld [vmem:[#allocation7 + $0x638] sm:$0xff]  ;;  %v290_v51 = vld [vmem:[#allocation7 + $0x6c0] sm:$0xff] }
  0x67   :  { %864 = vmatpush.msra.mxu2 %v239_v54  ;;  %883 = vmatpush.msra.mxu3 %v256_v55  ;;  %v272_v54 = vld [vmem:[#allocation7 + $0x630] sm:$0xff]  ;;  %v289_v55 = vld [vmem:[#allocation7 + $0x6b8] sm:$0xff] }
  0x68   :  { %825 = vmatpush.msra.mxu0 %v206_v56  ;;  %844 = vmatpush.msra.mxu1 %v223_v57  ;;  %v304_v56 = vld [vmem:[#allocation7 + $0x730] sm:$0xff]  ;;  %v321_v57 = vld [vmem:[#allocation7 + $0x7b8] sm:$0xff] }
  0x69   :  { %865 = vmatpush.msra.mxu2 %v238_v58  ;;  %884 = vmatpush.msra.mxu3 %v255_v59  ;;  %v271_v58 = vld [vmem:[#allocation7 + $0x628] sm:$0xff]  ;;  %v288_v59 = vld [vmem:[#allocation7 + $0x6b0] sm:$0xff] }
  0x6a   :  { %826 = vmatpush.msra.mxu0 %v205_v61  ;;  %845 = vmatpush.msra.mxu1 %v222_v62  ;;  %v320_v61 = vld [vmem:[#allocation7 + $0x7b0] sm:$0xff]  ;;  %v270_v62 = vld [vmem:[#allocation7 + $0x620] sm:$0xff] }
  0x6b   :  { %866 = vmatpush.msra.mxu2 %v237_v63  ;;  %885 = vmatpush.msra.mxu3 %v254_v0  ;;  %v287_v63 = vld [vmem:[#allocation7 + $0x6a8] sm:$0xff]  ;;  %v302_v0 = vld [vmem:[#allocation7 + $0x720] sm:$0xff] }
  0x6c   :  { %827 = vmatpush.msra.mxu0 %v204_v1  ;;  %846 = vmatpush.msra.mxu1 %v221_v2  ;;  %v319_v1 = vld [vmem:[#allocation7 + $0x7a8] sm:$0xff]  ;;  %v269_v2 = vld [vmem:[#allocation7 + $0x618] sm:$0xff] }
  0x6d   :  { %867 = vmatpush.msra.mxu2 %v236_v3  ;;  %886 = vmatpush.msra.mxu3 %v253_v4  ;;  %v286_v3 = vld [vmem:[#allocation7 + $0x6a0] sm:$0xff]  ;;  %v301_v4 = vld [vmem:[#allocation7 + $0x718] sm:$0xff] }
  0x6e   :  { %828 = vmatpush.msra.mxu0 %v203_v6  ;;  %847 = vmatpush.msra.mxu1 %v220_v7  ;;  %v318_v6 = vld [vmem:[#allocation7 + $0x7a0] sm:$0xff]  ;;  %v268_v7 = vld [vmem:[#allocation7 + $0x610] sm:$0xff] }
  0x6f   :  { %868 = vmatpush.msra.mxu2 %v235_v8  ;;  %887 = vmatpush.msra.mxu3 %v252_v9  ;;  %v285_v8 = vld [vmem:[#allocation7 + $0x698] sm:$0xff]  ;;  %v300_v9 = vld [vmem:[#allocation7 + $0x710] sm:$0xff] }
  0x70   :  { %829 = vmatpush.msra.mxu0 %v202_v10  ;;  %848 = vmatpush.msra.mxu1 %v219_v11  ;;  %v317_v10 = vld [vmem:[#allocation7 + $0x798] sm:$0xff]  ;;  %v267_v11 = vld [vmem:[#allocation7 + $0x608] sm:$0xff] }
  0x71   :  { %869 = vmatpush.msra.mxu2 %v234_v12  ;;  %888 = vmatpush.msra.mxu3 %v251_v13  ;;  %v284_v12 = vld [vmem:[#allocation7 + $0x690] sm:$0xff]  ;;  %v299_v13 = vld [vmem:[#allocation7 + $0x708] sm:$0xff] }
  0x72   :  { %830 = vmatmul.f32.vlgmr.msra.gmra.mxu0 %v598_v14  ;;  %870 = vmatmul.f32.vlgmr.msra.gmra.mxu2 %v600_v15  ;;  %v316_v14 = vld [vmem:[#allocation7 + $0x790] sm:$0xff]  ;;  %v266_v15 = vld [vmem:[#allocation7 + $0x600] sm:$0xff] }
  0x73   :  { %894 = vmatpush.msrb.mxu0 %v281_v16  ;;  %934 = vmatpush.msrb.mxu2 %v313_v17  ;;  %v283_v16 = vld [vmem:[#allocation7 + $0x688] sm:$0xff]  ;;  %v298_v17 = vld [vmem:[#allocation7 + $0x700] sm:$0xff] }
  0x74   :  { %849 = vmatpush.msra.mxu1 %v218_v18  ;;  %889 = vmatpush.msra.mxu3 %v250_v19  ;;  %v315_v18 = vld [vmem:[#allocation7 + $0x788] sm:$0xff]  ;;  %v602_v19 = vperm.slane %v1481_v5, 4 }
  0x75   :  { %850 = vmatmul.f32.vlgmr.msra.gmra.mxu1 %v599_v20  ;;  %890 = vmatmul.f32.vlgmr.msra.gmra.mxu3 %v601_v21  ;;  %v604_v20 = vperm.slane %v1481_v5, 6  ;;  %v345_v21 = vld [vmem:[#allocation7 + $0x878] sm:$0xff] }
  0x76   :  { %895 = vmatpush.msrb.mxu0 %v280_v22  ;;  %914 = vmatpush.msrb.mxu1 %v297_v23  ;;  %v377_v22 = vld [vmem:[#allocation7 + $0x978] sm:$0xff]  ;;  %v282_v23 = vld [vmem:[#allocation7 + $0x680] sm:$0xff] }
  0x77   :  { %935 = vmatpush.msrb.mxu2 %v312_v24  ;;  %954 = vmatpush.msrb.mxu3 %v329_v25  ;;  %v314_v24 = vld [vmem:[#allocation7 + $0x780] sm:$0xff]  ;;  %v603_v25 = vperm.slane %v1481_v5, 5 }
  0x78   :  { %896 = vmatpush.msrb.mxu0 %v279_v26  ;;  %915 = vmatpush.msrb.mxu1 %v296_v27  ;;  %v605_v26 = vperm.slane %v1481_v5, 7  ;;  %v344_v27 = vld [vmem:[#allocation7 + $0x870] sm:$0xff]  ;;  %v342_v5 = vld [vmem:[#allocation7 + $0x860] sm:$0xff] }
  0x79   :  { %936 = vmatpush.msrb.mxu2 %v311_v28  ;;  %955 = vmatpush.msrb.mxu3 %v328_v29  ;;  %v361_v28 = vld [vmem:[#allocation7 + $0x8f8] sm:$0xff]  ;;  %v376_v29 = vld [vmem:[#allocation7 + $0x970] sm:$0xff] }
  0x7a   :  { %897 = vmatpush.msrb.mxu0 %v278_v30  ;;  %916 = vmatpush.msrb.mxu1 %v295_v31  ;;  %v393_v30 = vld [vmem:[#allocation7 + $0x9f8] sm:$0xff]  ;;  %v343_v31 = vld [vmem:[#allocation7 + $0x868] sm:$0xff] }
  0x7b   :  { %937 = vmatpush.msrb.mxu2 %v310_v32  ;;  %956 = vmatpush.msrb.mxu3 %v327_v33  ;;  %v360_v32 = vld [vmem:[#allocation7 + $0x8f0] sm:$0xff]  ;;  %v375_v33 = vld [vmem:[#allocation7 + $0x968] sm:$0xff] }
  0x7c   :  { %898 = vmatpush.msrb.mxu0 %v277_v34  ;;  %917 = vmatpush.msrb.mxu1 %v294_v35  ;;  %v392_v34 = vld [vmem:[#allocation7 + $0x9f0] sm:$0xff]  ;;  %v359_v35 = vld [vmem:[#allocation7 + $0x8e8] sm:$0xff] }
  0x7d   :  { %938 = vmatpush.msrb.mxu2 %v309_v36  ;;  %957 = vmatpush.msrb.mxu3 %v326_v37  ;;  %v374_v36 = vld [vmem:[#allocation7 + $0x960] sm:$0xff]  ;;  %v391_v37 = vld [vmem:[#allocation7 + $0x9e8] sm:$0xff] }
  0x7e   :  { %899 = vmatpush.msrb.mxu0 %v276_v38  ;;  %918 = vmatpush.msrb.mxu1 %v293_v39  ;;  %v341_v38 = vld [vmem:[#allocation7 + $0x858] sm:$0xff]  ;;  %v358_v39 = vld [vmem:[#allocation7 + $0x8e0] sm:$0xff] }
  0x7f   :  { %939 = vmatpush.msrb.mxu2 %v308_v40  ;;  %958 = vmatpush.msrb.mxu3 %v325_v41  ;;  %v373_v40 = vld [vmem:[#allocation7 + $0x958] sm:$0xff]  ;;  %v390_v41 = vld [vmem:[#allocation7 + $0x9e0] sm:$0xff] }
  0x80   :  { %900 = vmatpush.msrb.mxu0 %v275_v42  ;;  %919 = vmatpush.msrb.mxu1 %v292_v43  ;;  %v340_v42 = vld [vmem:[#allocation7 + $0x850] sm:$0xff]  ;;  %v357_v43 = vld [vmem:[#allocation7 + $0x8d8] sm:$0xff] }
  0x81   :  { %940 = vmatpush.msrb.mxu2 %v307_v44  ;;  %959 = vmatpush.msrb.mxu3 %v324_v45  ;;  %v372_v44 = vld [vmem:[#allocation7 + $0x950] sm:$0xff]  ;;  %v389_v45 = vld [vmem:[#allocation7 + $0x9d8] sm:$0xff] }
  0x82   :  { %901 = vmatpush.msrb.mxu0 %v274_v46  ;;  %920 = vmatpush.msrb.mxu1 %v291_v47  ;;  %v339_v46 = vld [vmem:[#allocation7 + $0x848] sm:$0xff]  ;;  %v356_v47 = vld [vmem:[#allocation7 + $0x8d0] sm:$0xff] }
  0x83   :  { %941 = vmatpush.msrb.mxu2 %v306_v48  ;;  %960 = vmatpush.msrb.mxu3 %v323_v49  ;;  %v371_v48 = vld [vmem:[#allocation7 + $0x948] sm:$0xff]  ;;  %v388_v49 = vld [vmem:[#allocation7 + $0x9d0] sm:$0xff] }
  0x84   :  { %902 = vmatpush.msrb.mxu0 %v273_v50  ;;  %921 = vmatpush.msrb.mxu1 %v290_v51  ;;  %v338_v50 = vld [vmem:[#allocation7 + $0x840] sm:$0xff]  ;;  %v355_v51 = vld [vmem:[#allocation7 + $0x8c8] sm:$0xff] }
  0x85   :  { %942 = vmatpush.msrb.mxu2 %v305_v52  ;;  %961 = vmatpush.msrb.mxu3 %v322_v53  ;;  %v370_v52 = vld [vmem:[#allocation7 + $0x940] sm:$0xff]  ;;  %v387_v53 = vld [vmem:[#allocation7 + $0x9c8] sm:$0xff] }
  0x86   :  { %903 = vmatpush.msrb.mxu0 %v272_v54  ;;  %922 = vmatpush.msrb.mxu1 %v289_v55  ;;  %v337_v54 = vld [vmem:[#allocation7 + $0x838] sm:$0xff]  ;;  %v354_v55 = vld [vmem:[#allocation7 + $0x8c0] sm:$0xff] }
  0x87   :  { %943 = vmatpush.msrb.mxu2 %v304_v56  ;;  %962 = vmatpush.msrb.mxu3 %v321_v57  ;;  %v369_v56 = vld [vmem:[#allocation7 + $0x938] sm:$0xff]  ;;  %v386_v57 = vld [vmem:[#allocation7 + $0x9c0] sm:$0xff] }
  0x88   :  { %904 = vmatpush.msrb.mxu0 %v271_v58  ;;  %923 = vmatpush.msrb.mxu1 %v288_v59  ;;  %v336_v58 = vld [vmem:[#allocation7 + $0x830] sm:$0xff]  ;;  %v353_v59 = vld [vmem:[#allocation7 + $0x8b8] sm:$0xff] }
  0x89   :  { %944 = vmatpush.msrb.mxu2 %v303_v60  ;;  %963 = vmatpush.msrb.mxu3 %v320_v61  ;;  %v368_v60 = vld [vmem:[#allocation7 + $0x930] sm:$0xff]  ;;  %v385_v61 = vld [vmem:[#allocation7 + $0x9b8] sm:$0xff] }
  0x8a   :  { %905 = vmatpush.msrb.mxu0 %v270_v62  ;;  %924 = vmatpush.msrb.mxu1 %v287_v63  ;;  %v335_v62 = vld [vmem:[#allocation7 + $0x828] sm:$0xff]  ;;  %v352_v63 = vld [vmem:[#allocation7 + $0x8b0] sm:$0xff] }
  0x8b   :  { %945 = vmatpush.msrb.mxu2 %v302_v0  ;;  %964 = vmatpush.msrb.mxu3 %v319_v1  ;;  %v60_v0 = vld [vmem:[#allocation2 + $0x10] sm:$0xff] }
  0x8c   :  { %906 = vmatpush.msrb.mxu0 %v269_v2  ;;  %925 = vmatpush.msrb.mxu1 %v286_v3  ;;  %v64_v1 = vld [vmem:[#allocation5 + $0x10] sm:$0xff]  ;;  %v367_v2 = vld [vmem:[#allocation7 + $0x928] sm:$0xff] }
  0x8d   :  { %946 = vmatpush.msrb.mxu2 %v301_v4  ;;  %965 = vmatpush.msrb.mxu3 %v318_v6  ;;  %v384_v3 = vld [vmem:[#allocation7 + $0x9b0] sm:$0xff]  ;;  %v334_v4 = vld [vmem:[#allocation7 + $0x820] sm:$0xff]  ;;  %v351_v6 = vld [vmem:[#allocation7 + $0x8a8] sm:$0xff] }
  0x8e   :  { %907 = vmatpush.msrb.mxu0 %v268_v7  ;;  %926 = vmatpush.msrb.mxu1 %v285_v8  ;;  %v366_v7 = vld [vmem:[#allocation7 + $0x920] sm:$0xff]  ;;  %v383_v8 = vld [vmem:[#allocation7 + $0x9a8] sm:$0xff] }
  0x8f   :  { %947 = vmatpush.msrb.mxu2 %v300_v9  ;;  %966 = vmatpush.msrb.mxu3 %v317_v10  ;;  %v68_v9 = vsub.f32 %v60_v0, %v64_v1  ;;  %v333_v10 = vld [vmem:[#allocation7 + $0x818] sm:$0xff]  ;;  %v450_v1 = vld [vmem:[#allocation7 + $0xbc0] sm:$0xff] }
  0x90   :  { %908 = vmatpush.msrb.mxu0 %v267_v11  ;;  %927 = vmatpush.msrb.mxu1 %v284_v12  ;;  %v350_v11 = vld [vmem:[#allocation7 + $0x8a0] sm:$0xff]  ;;  %v365_v12 = vld [vmem:[#allocation7 + $0x918] sm:$0xff] }
  0x91   :  { %948 = vmatpush.msrb.mxu2 %v299_v13  ;;  %967 = vmatpush.msrb.mxu3 %v316_v14  ;;  %v382_v13 = vld [vmem:[#allocation7 + $0x9a0] sm:$0xff]  ;;  %v332_v14 = vld [vmem:[#allocation7 + $0x810] sm:$0xff]  ;;  %v433_v0 = vld [vmem:[#allocation7 + $0xb38] sm:$0xff] }
  0x92   :  { %909 = vmatpush.msrb.mxu0 %v266_v15  ;;  %928 = vmatpush.msrb.mxu1 %v283_v16  ;;  %v349_v15 = vld [vmem:[#allocation7 + $0x898] sm:$0xff]  ;;  %v364_v16 = vld [vmem:[#allocation7 + $0x910] sm:$0xff] }
  0x93   :  { %949 = vmatpush.msrb.mxu2 %v298_v17  ;;  %968 = vmatpush.msrb.mxu3 %v315_v18  ;;  %v381_v17 = vld [vmem:[#allocation7 + $0x998] sm:$0xff]  ;;  %v1491_v18 = vmul.f32 %v68_v9, %v68_v9  ;;  %v431_v9 = vld [vmem:[#allocation7 + $0xb28] sm:$0xff] }
  0x94   :  { %910 = vmatmul.f32.vlgmr.msrb.gmra.mxu0 %v602_v19  ;;  %950 = vmatmul.f32.vlgmr.msrb.gmra.mxu2 %v604_v20  ;;  %v331_v19 = vld [vmem:[#allocation7 + $0x808] sm:$0xff]  ;;  %v348_v20 = vld [vmem:[#allocation7 + $0x890] sm:$0xff] }
  0x95   :  { %974 = vmatpush.msra.mxu0 %v345_v21  ;;  %1014 = vmatpush.msra.mxu2 %v377_v22  ;;  %v363_v21 = vld [vmem:[#allocation7 + $0x908] sm:$0xff]  ;;  %v380_v22 = vld [vmem:[#allocation7 + $0x990] sm:$0xff] }
  0x96   :  { %929 = vmatpush.msrb.mxu1 %v282_v23  ;;  %969 = vmatpush.msrb.mxu3 %v314_v24  ;;  %v330_v23 = vld [vmem:[#allocation7 + $0x800] sm:$0xff]  ;;  %v347_v24 = vld [vmem:[#allocation7 + $0x888] sm:$0xff] }
  0x97   :  { %930 = vmatmul.f32.vlgmr.msrb.gmra.mxu1 %v603_v25  ;;  %970 = vmatmul.f32.vlgmr.msrb.gmra.mxu3 %v605_v26  ;;  %v362_v25 = vld [vmem:[#allocation7 + $0x900] sm:$0xff]  ;;  %v379_v26 = vld [vmem:[#allocation7 + $0x988] sm:$0xff] }
  0x98   :  { %975 = vmatpush.msra.mxu0 %v344_v27  ;;  %994 = vmatpush.msra.mxu1 %v361_v28  ;;  %v606_v27 = vperm.slane %v1491_v18, 0  ;;  %v608_v28 = vperm.slane %v1491_v18, 2 }
  0x99   :  { %1015 = vmatpush.msra.mxu2 %v376_v29  ;;  %1034 = vmatpush.msra.mxu3 %v393_v30  ;;  %v409_v29 = vld [vmem:[#allocation7 + $0xa78] sm:$0xff] }
  0x9a   :  { %976 = vmatpush.msra.mxu0 %v343_v31  ;;  %995 = vmatpush.msra.mxu1 %v360_v32  ;;  %v441_v30 = vld [vmem:[#allocation7 + $0xb78] sm:$0xff]  ;;  %v346_v31 = vld [vmem:[#allocation7 + $0x880] sm:$0xff] }
  0x9b   :  { %1016 = vmatpush.msra.mxu2 %v375_v33  ;;  %1035 = vmatpush.msra.mxu3 %v392_v34  ;;  %v378_v32 = vld [vmem:[#allocation7 + $0x980] sm:$0xff]  ;;  %v607_v33 = vperm.slane %v1491_v18, 1  ;;  %v609_v34 = vperm.slane %v1491_v18, 3 }
  0x9c   :  { %977 = vmatpush.msra.mxu0 %v342_v5  ;;  %996 = vmatpush.msra.mxu1 %v359_v35  ;;  %v408_v5 = vld [vmem:[#allocation7 + $0xa70] sm:$0xff]  ;;  %v425_v35 = vld [vmem:[#allocation7 + $0xaf8] sm:$0xff] }
  0x9d   :  { %1017 = vmatpush.msra.mxu2 %v374_v36  ;;  %1036 = vmatpush.msra.mxu3 %v391_v37  ;;  %v440_v36 = vld [vmem:[#allocation7 + $0xb70] sm:$0xff]  ;;  %v457_v37 = vld [vmem:[#allocation7 + $0xbf8] sm:$0xff] }
  0x9e   :  { %978 = vmatpush.msra.mxu0 %v341_v38  ;;  %997 = vmatpush.msra.mxu1 %v358_v39  ;;  %v407_v38 = vld [vmem:[#allocation7 + $0xa68] sm:$0xff]  ;;  %v424_v39 = vld [vmem:[#allocation7 + $0xaf0] sm:$0xff] }
  0x9f   :  { %1018 = vmatpush.msra.mxu2 %v373_v40  ;;  %1037 = vmatpush.msra.mxu3 %v390_v41  ;;  %v439_v40 = vld [vmem:[#allocation7 + $0xb68] sm:$0xff]  ;;  %v456_v41 = vld [vmem:[#allocation7 + $0xbf0] sm:$0xff] }
  0xa0   :  { %979 = vmatpush.msra.mxu0 %v340_v42  ;;  %998 = vmatpush.msra.mxu1 %v357_v43  ;;  %v406_v42 = vld [vmem:[#allocation7 + $0xa60] sm:$0xff]  ;;  %v423_v43 = vld [vmem:[#allocation7 + $0xae8] sm:$0xff] }
  0xa1   :  { %1019 = vmatpush.msra.mxu2 %v372_v44  ;;  %1038 = vmatpush.msra.mxu3 %v389_v45  ;;  %v438_v44 = vld [vmem:[#allocation7 + $0xb60] sm:$0xff]  ;;  %v455_v45 = vld [vmem:[#allocation7 + $0xbe8] sm:$0xff] }
  0xa2   :  { %980 = vmatpush.msra.mxu0 %v339_v46  ;;  %999 = vmatpush.msra.mxu1 %v356_v47  ;;  %v405_v46 = vld [vmem:[#allocation7 + $0xa58] sm:$0xff]  ;;  %v422_v47 = vld [vmem:[#allocation7 + $0xae0] sm:$0xff] }
  0xa3   :  { %1020 = vmatpush.msra.mxu2 %v371_v48  ;;  %1039 = vmatpush.msra.mxu3 %v388_v49  ;;  %v437_v48 = vld [vmem:[#allocation7 + $0xb58] sm:$0xff]  ;;  %v454_v49 = vld [vmem:[#allocation7 + $0xbe0] sm:$0xff] }
  0xa4   :  { %981 = vmatpush.msra.mxu0 %v338_v50  ;;  %1000 = vmatpush.msra.mxu1 %v355_v51  ;;  %v404_v50 = vld [vmem:[#allocation7 + $0xa50] sm:$0xff]  ;;  %v421_v51 = vld [vmem:[#allocation7 + $0xad8] sm:$0xff] }
  0xa5   :  { %1021 = vmatpush.msra.mxu2 %v370_v52  ;;  %1040 = vmatpush.msra.mxu3 %v387_v53  ;;  %v436_v52 = vld [vmem:[#allocation7 + $0xb50] sm:$0xff]  ;;  %v453_v53 = vld [vmem:[#allocation7 + $0xbd8] sm:$0xff] }
  0xa6   :  { %982 = vmatpush.msra.mxu0 %v337_v54  ;;  %1001 = vmatpush.msra.mxu1 %v354_v55  ;;  %v403_v54 = vld [vmem:[#allocation7 + $0xa48] sm:$0xff]  ;;  %v420_v55 = vld [vmem:[#allocation7 + $0xad0] sm:$0xff] }
  0xa7   :  { %1022 = vmatpush.msra.mxu2 %v369_v56  ;;  %1041 = vmatpush.msra.mxu3 %v386_v57  ;;  %v435_v56 = vld [vmem:[#allocation7 + $0xb48] sm:$0xff]  ;;  %v452_v57 = vld [vmem:[#allocation7 + $0xbd0] sm:$0xff] }
  0xa8   :  { %983 = vmatpush.msra.mxu0 %v336_v58  ;;  %1002 = vmatpush.msra.mxu1 %v353_v59  ;;  %v402_v58 = vld [vmem:[#allocation7 + $0xa40] sm:$0xff]  ;;  %v419_v59 = vld [vmem:[#allocation7 + $0xac8] sm:$0xff] }
  0xa9   :  { %1023 = vmatpush.msra.mxu2 %v368_v60  ;;  %1042 = vmatpush.msra.mxu3 %v385_v61  ;;  %v434_v60 = vld [vmem:[#allocation7 + $0xb40] sm:$0xff]  ;;  %v451_v61 = vld [vmem:[#allocation7 + $0xbc8] sm:$0xff] }
  0xaa   :  { %984 = vmatpush.msra.mxu0 %v335_v62  ;;  %1003 = vmatpush.msra.mxu1 %v352_v63  ;;  %v401_v62 = vld [vmem:[#allocation7 + $0xa38] sm:$0xff]  ;;  %v418_v63 = vld [vmem:[#allocation7 + $0xac0] sm:$0xff] }
  0xab   :  { %1024 = vmatpush.msra.mxu2 %v367_v2  ;;  %1043 = vmatpush.msra.mxu3 %v384_v3  ;;  %v400_v2 = vld [vmem:[#allocation7 + $0xa30] sm:$0xff]  ;;  %v417_v3 = vld [vmem:[#allocation7 + $0xab8] sm:$0xff] }
  0xac   :  { %985 = vmatpush.msra.mxu0 %v334_v4  ;;  %1004 = vmatpush.msra.mxu1 %v351_v6  ;;  %v432_v4 = vld [vmem:[#allocation7 + $0xb30] sm:$0xff]  ;;  %v449_v6 = vld [vmem:[#allocation7 + $0xbb8] sm:$0xff] }
  0xad   :  { %1025 = vmatpush.msra.mxu2 %v366_v7  ;;  %1044 = vmatpush.msra.mxu3 %v383_v8  ;;  %v399_v7 = vld [vmem:[#allocation7 + $0xa28] sm:$0xff]  ;;  %v416_v8 = vld [vmem:[#allocation7 + $0xab0] sm:$0xff] }
  0xae   :  { %986 = vmatpush.msra.mxu0 %v333_v10  ;;  %1005 = vmatpush.msra.mxu1 %v350_v11  ;;  %v448_v10 = vld [vmem:[#allocation7 + $0xbb0] sm:$0xff]  ;;  %v398_v11 = vld [vmem:[#allocation7 + $0xa20] sm:$0xff] }
  0xaf   :  { %1026 = vmatpush.msra.mxu2 %v365_v12  ;;  %1045 = vmatpush.msra.mxu3 %v382_v13  ;;  %v415_v12 = vld [vmem:[#allocation7 + $0xaa8] sm:$0xff]  ;;  %v430_v13 = vld [vmem:[#allocation7 + $0xb20] sm:$0xff] }
  0xb0   :  { %987 = vmatpush.msra.mxu0 %v332_v14  ;;  %1006 = vmatpush.msra.mxu1 %v349_v15  ;;  %v447_v14 = vld [vmem:[#allocation7 + $0xba8] sm:$0xff]  ;;  %v397_v15 = vld [vmem:[#allocation7 + $0xa18] sm:$0xff] }
  0xb1   :  { %1027 = vmatpush.msra.mxu2 %v364_v16  ;;  %1046 = vmatpush.msra.mxu3 %v381_v17  ;;  %v414_v16 = vld [vmem:[#allocation7 + $0xaa0] sm:$0xff]  ;;  %v429_v17 = vld [vmem:[#allocation7 + $0xb18] sm:$0xff] }
  0xb2   :  { %988 = vmatpush.msra.mxu0 %v331_v19  ;;  %1007 = vmatpush.msra.mxu1 %v348_v20  ;;  %v446_v19 = vld [vmem:[#allocation7 + $0xba0] sm:$0xff]  ;;  %v396_v20 = vld [vmem:[#allocation7 + $0xa10] sm:$0xff] }
  0xb3   :  { %1028 = vmatpush.msra.mxu2 %v363_v21  ;;  %1047 = vmatpush.msra.mxu3 %v380_v22  ;;  %v413_v21 = vld [vmem:[#allocation7 + $0xa98] sm:$0xff]  ;;  %v428_v22 = vld [vmem:[#allocation7 + $0xb10] sm:$0xff] }
  0xb4   :  { %989 = vmatpush.msra.mxu0 %v330_v23  ;;  %1008 = vmatpush.msra.mxu1 %v347_v24  ;;  %v445_v23 = vld [vmem:[#allocation7 + $0xb98] sm:$0xff]  ;;  %v395_v24 = vld [vmem:[#allocation7 + $0xa08] sm:$0xff] }
  0xb5   :  { %1029 = vmatpush.msra.mxu2 %v362_v25  ;;  %1048 = vmatpush.msra.mxu3 %v379_v26  ;;  %v412_v25 = vld [vmem:[#allocation7 + $0xa90] sm:$0xff]  ;;  %v427_v26 = vld [vmem:[#allocation7 + $0xb08] sm:$0xff] }
  0xb6   :  { %990 = vmatmul.f32.vlgmr.msra.gmra.mxu0 %v606_v27  ;;  %1030 = vmatmul.f32.vlgmr.msra.gmra.mxu2 %v608_v28  ;;  %v444_v27 = vld [vmem:[#allocation7 + $0xb90] sm:$0xff]  ;;  %v394_v28 = vld [vmem:[#allocation7 + $0xa00] sm:$0xff] }
  0xb7   :  { %1054 = vmatpush.msrb.mxu0 %v409_v29  ;;  %1094 = vmatpush.msrb.mxu2 %v441_v30  ;;  %v411_v29 = vld [vmem:[#allocation7 + $0xa88] sm:$0xff]  ;;  %v426_v30 = vld [vmem:[#allocation7 + $0xb00] sm:$0xff] }
  0xb8   :  { %1009 = vmatpush.msra.mxu1 %v346_v31  ;;  %1049 = vmatpush.msra.mxu3 %v378_v32  ;;  %v443_v31 = vld [vmem:[#allocation7 + $0xb88] sm:$0xff]  ;;  %v610_v32 = vperm.slane %v1491_v18, 4 }
  0xb9   :  { %1010 = vmatmul.f32.vlgmr.msra.gmra.mxu1 %v607_v33  ;;  %1050 = vmatmul.f32.vlgmr.msra.gmra.mxu3 %v609_v34  ;;  %v612_v33 = vperm.slane %v1491_v18, 6  ;;  %v473_v34 = vld [vmem:[#allocation7 + $0xc78] sm:$0xff] }
  0xba   :  { %1055 = vmatpush.msrb.mxu0 %v408_v5  ;;  %1074 = vmatpush.msrb.mxu1 %v425_v35  ;;  %v505_v5 = vld [vmem:[#allocation7 + $0xd78] sm:$0xff]  ;;  %v410_v35 = vld [vmem:[#allocation7 + $0xa80] sm:$0xff] }
  0xbb   :  { %1095 = vmatpush.msrb.mxu2 %v440_v36  ;;  %1114 = vmatpush.msrb.mxu3 %v457_v37  ;;  %v442_v36 = vld [vmem:[#allocation7 + $0xb80] sm:$0xff]  ;;  %v611_v37 = vperm.slane %v1491_v18, 5 }
  0xbc   :  { %1056 = vmatpush.msrb.mxu0 %v407_v38  ;;  %1075 = vmatpush.msrb.mxu1 %v424_v39  ;;  %v613_v38 = vperm.slane %v1491_v18, 7  ;;  %v472_v39 = vld [vmem:[#allocation7 + $0xc70] sm:$0xff]  ;;  %v470_v18 = vld [vmem:[#allocation7 + $0xc60] sm:$0xff] }
  0xbd   :  { %1096 = vmatpush.msrb.mxu2 %v439_v40  ;;  %1115 = vmatpush.msrb.mxu3 %v456_v41  ;;  %v489_v40 = vld [vmem:[#allocation7 + $0xcf8] sm:$0xff]  ;;  %v504_v41 = vld [vmem:[#allocation7 + $0xd70] sm:$0xff] }
  0xbe   :  { %1057 = vmatpush.msrb.mxu0 %v406_v42  ;;  %1076 = vmatpush.msrb.mxu1 %v423_v43  ;;  %v521_v42 = vld [vmem:[#allocation7 + $0xdf8] sm:$0xff]  ;;  %v471_v43 = vld [vmem:[#allocation7 + $0xc68] sm:$0xff] }
  0xbf   :  { %1097 = vmatpush.msrb.mxu2 %v438_v44  ;;  %1116 = vmatpush.msrb.mxu3 %v455_v45  ;;  %v488_v44 = vld [vmem:[#allocation7 + $0xcf0] sm:$0xff]  ;;  %v503_v45 = vld [vmem:[#allocation7 + $0xd68] sm:$0xff] }
  0xc0   :  { %1058 = vmatpush.msrb.mxu0 %v405_v46  ;;  %1077 = vmatpush.msrb.mxu1 %v422_v47  ;;  %v520_v46 = vld [vmem:[#allocation7 + $0xdf0] sm:$0xff]  ;;  %v487_v47 = vld [vmem:[#allocation7 + $0xce8] sm:$0xff] }
  0xc1   :  { %1098 = vmatpush.msrb.mxu2 %v437_v48  ;;  %1117 = vmatpush.msrb.mxu3 %v454_v49  ;;  %v502_v48 = vld [vmem:[#allocation7 + $0xd60] sm:$0xff]  ;;  %v519_v49 = vld [vmem:[#allocation7 + $0xde8] sm:$0xff] }
  0xc2   :  { %1059 = vmatpush.msrb.mxu0 %v404_v50  ;;  %1078 = vmatpush.msrb.mxu1 %v421_v51  ;;  %v469_v50 = vld [vmem:[#allocation7 + $0xc58] sm:$0xff]  ;;  %v486_v51 = vld [vmem:[#allocation7 + $0xce0] sm:$0xff] }
  0xc3   :  { %1099 = vmatpush.msrb.mxu2 %v436_v52  ;;  %1118 = vmatpush.msrb.mxu3 %v453_v53  ;;  %v501_v52 = vld [vmem:[#allocation7 + $0xd58] sm:$0xff]  ;;  %v518_v53 = vld [vmem:[#allocation7 + $0xde0] sm:$0xff] }
  0xc4   :  { %1060 = vmatpush.msrb.mxu0 %v403_v54  ;;  %1079 = vmatpush.msrb.mxu1 %v420_v55  ;;  %v468_v54 = vld [vmem:[#allocation7 + $0xc50] sm:$0xff]  ;;  %v485_v55 = vld [vmem:[#allocation7 + $0xcd8] sm:$0xff] }
  0xc5   :  { %1100 = vmatpush.msrb.mxu2 %v435_v56  ;;  %1119 = vmatpush.msrb.mxu3 %v452_v57  ;;  %v500_v56 = vld [vmem:[#allocation7 + $0xd50] sm:$0xff]  ;;  %v517_v57 = vld [vmem:[#allocation7 + $0xdd8] sm:$0xff] }
  0xc6   :  { %1061 = vmatpush.msrb.mxu0 %v402_v58  ;;  %1080 = vmatpush.msrb.mxu1 %v419_v59  ;;  %v467_v58 = vld [vmem:[#allocation7 + $0xc48] sm:$0xff]  ;;  %v484_v59 = vld [vmem:[#allocation7 + $0xcd0] sm:$0xff] }
  0xc7   :  { %1101 = vmatpush.msrb.mxu2 %v434_v60  ;;  %1120 = vmatpush.msrb.mxu3 %v451_v61  ;;  %v499_v60 = vld [vmem:[#allocation7 + $0xd48] sm:$0xff]  ;;  %v516_v61 = vld [vmem:[#allocation7 + $0xdd0] sm:$0xff] }
  0xc8   :  { %1062 = vmatpush.msrb.mxu0 %v401_v62  ;;  %1081 = vmatpush.msrb.mxu1 %v418_v63  ;;  %v466_v62 = vld [vmem:[#allocation7 + $0xc40] sm:$0xff]  ;;  %v483_v63 = vld [vmem:[#allocation7 + $0xcc8] sm:$0xff] }
  0xc9   :  { %1102 = vmatpush.msrb.mxu2 %v433_v0  ;;  %1121 = vmatpush.msrb.mxu3 %v450_v1  ;;  %v498_v0 = vld [vmem:[#allocation7 + $0xd40] sm:$0xff]  ;;  %v515_v1 = vld [vmem:[#allocation7 + $0xdc8] sm:$0xff] }
  0xca   :  { %1063 = vmatpush.msrb.mxu0 %v400_v2  ;;  %1082 = vmatpush.msrb.mxu1 %v417_v3  ;;  %v465_v2 = vld [vmem:[#allocation7 + $0xc38] sm:$0xff]  ;;  %v482_v3 = vld [vmem:[#allocation7 + $0xcc0] sm:$0xff] }
  0xcb   :  { %1103 = vmatpush.msrb.mxu2 %v432_v4  ;;  %1122 = vmatpush.msrb.mxu3 %v449_v6  ;;  %v497_v4 = vld [vmem:[#allocation7 + $0xd38] sm:$0xff]  ;;  %v514_v6 = vld [vmem:[#allocation7 + $0xdc0] sm:$0xff] }
  0xcc   :  { %1064 = vmatpush.msrb.mxu0 %v399_v7  ;;  %1083 = vmatpush.msrb.mxu1 %v416_v8  ;;  %v464_v7 = vld [vmem:[#allocation7 + $0xc30] sm:$0xff]  ;;  %v481_v8 = vld [vmem:[#allocation7 + $0xcb8] sm:$0xff] }
  0xcd   :  { %1104 = vmatpush.msrb.mxu2 %v431_v9  ;;  %1123 = vmatpush.msrb.mxu3 %v448_v10  ;;  %v496_v9 = vld [vmem:[#allocation7 + $0xd30] sm:$0xff]  ;;  %v513_v10 = vld [vmem:[#allocation7 + $0xdb8] sm:$0xff] }
  0xce   :  { %1065 = vmatpush.msrb.mxu0 %v398_v11  ;;  %1084 = vmatpush.msrb.mxu1 %v415_v12  ;;  %v463_v11 = vld [vmem:[#allocation7 + $0xc28] sm:$0xff]  ;;  %v480_v12 = vld [vmem:[#allocation7 + $0xcb0] sm:$0xff] }
  0xcf   :  { %1105 = vmatpush.msrb.mxu2 %v430_v13  ;;  %1124 = vmatpush.msrb.mxu3 %v447_v14  ;;  %v61_v13 = vld [vmem:[#allocation2 + $0x18] sm:$0xff] }
  0xd0   :  { %1066 = vmatpush.msrb.mxu0 %v397_v15  ;;  %1085 = vmatpush.msrb.mxu1 %v414_v16  ;;  %v65_v14 = vld [vmem:[#allocation5 + $0x18] sm:$0xff]  ;;  %v495_v15 = vld [vmem:[#allocation7 + $0xd28] sm:$0xff]  ;;  %v512_v16 = vld [vmem:[#allocation7 + $0xdb0] sm:$0xff] }
  0xd1   :  { %1106 = vmatpush.msrb.mxu2 %v429_v17  ;;  %1125 = vmatpush.msrb.mxu3 %v446_v19  ;;  %v462_v17 = vld [vmem:[#allocation7 + $0xc20] sm:$0xff]  ;;  %v479_v19 = vld [vmem:[#allocation7 + $0xca8] sm:$0xff] }
  0xd2   :  { %1067 = vmatpush.msrb.mxu0 %v396_v20  ;;  %1086 = vmatpush.msrb.mxu1 %v413_v21  ;;  %v494_v20 = vld [vmem:[#allocation7 + $0xd20] sm:$0xff]  ;;  %v511_v21 = vld [vmem:[#allocation7 + $0xda8] sm:$0xff] }
  0xd3   :  { %1107 = vmatpush.msrb.mxu2 %v428_v22  ;;  %1126 = vmatpush.msrb.mxu3 %v445_v23  ;;  %v69_v22 = vsub.f32 %v61_v13, %v65_v14  ;;  %v461_v23 = vld [vmem:[#allocation7 + $0xc18] sm:$0xff]  ;;  %v578_v14 = vld [vmem:[#allocation7 + $0xfc0] sm:$0xff] }
  0xd4   :  { %1068 = vmatpush.msrb.mxu0 %v395_v24  ;;  %1087 = vmatpush.msrb.mxu1 %v412_v25  ;;  %v478_v24 = vld [vmem:[#allocation7 + $0xca0] sm:$0xff]  ;;  %v493_v25 = vld [vmem:[#allocation7 + $0xd18] sm:$0xff] }
  0xd5   :  { %1108 = vmatpush.msrb.mxu2 %v427_v26  ;;  %1127 = vmatpush.msrb.mxu3 %v444_v27  ;;  %v510_v26 = vld [vmem:[#allocation7 + $0xda0] sm:$0xff]  ;;  %v460_v27 = vld [vmem:[#allocation7 + $0xc10] sm:$0xff]  ;;  %v561_v13 = vld [vmem:[#allocation7 + $0xf38] sm:$0xff] }
  0xd6   :  { %1069 = vmatpush.msrb.mxu0 %v394_v28  ;;  %1088 = vmatpush.msrb.mxu1 %v411_v29  ;;  %v477_v28 = vld [vmem:[#allocation7 + $0xc98] sm:$0xff]  ;;  %v492_v29 = vld [vmem:[#allocation7 + $0xd10] sm:$0xff] }
  0xd7   :  { %1109 = vmatpush.msrb.mxu2 %v426_v30  ;;  %1128 = vmatpush.msrb.mxu3 %v443_v31  ;;  %v509_v30 = vld [vmem:[#allocation7 + $0xd98] sm:$0xff]  ;;  %v1501_v31 = vmul.f32 %v69_v22, %v69_v22  ;;  %v559_v22 = vld [vmem:[#allocation7 + $0xf28] sm:$0xff] }
  0xd8   :  { %1070 = vmatmul.f32.vlgmr.msrb.gmra.mxu0 %v610_v32  ;;  %1110 = vmatmul.f32.vlgmr.msrb.gmra.mxu2 %v612_v33  ;;  %v459_v32 = vld [vmem:[#allocation7 + $0xc08] sm:$0xff]  ;;  %v476_v33 = vld [vmem:[#allocation7 + $0xc90] sm:$0xff] }
  0xd9   :  { %1134 = vmatpush.msra.mxu0 %v473_v34  ;;  %1174 = vmatpush.msra.mxu2 %v505_v5  ;;  %v491_v34 = vld [vmem:[#allocation7 + $0xd08] sm:$0xff]  ;;  %v508_v5 = vld [vmem:[#allocation7 + $0xd90] sm:$0xff] }
  0xda   :  { %1089 = vmatpush.msrb.mxu1 %v410_v35  ;;  %1129 = vmatpush.msrb.mxu3 %v442_v36  ;;  %v458_v35 = vld [vmem:[#allocation7 + $0xc00] sm:$0xff]  ;;  %v475_v36 = vld [vmem:[#allocation7 + $0xc88] sm:$0xff] }
  0xdb   :  { %1090 = vmatmul.f32.vlgmr.msrb.gmra.mxu1 %v611_v37  ;;  %1130 = vmatmul.f32.vlgmr.msrb.gmra.mxu3 %v613_v38  ;;  %v490_v37 = vld [vmem:[#allocation7 + $0xd00] sm:$0xff]  ;;  %v507_v38 = vld [vmem:[#allocation7 + $0xd88] sm:$0xff] }
  0xdc   :  { %1135 = vmatpush.msra.mxu0 %v472_v39  ;;  %1154 = vmatpush.msra.mxu1 %v489_v40  ;;  %v614_v39 = vperm.slane %v1501_v31, 0  ;;  %v616_v40 = vperm.slane %v1501_v31, 2 }
  0xdd   :  { %1175 = vmatpush.msra.mxu2 %v504_v41  ;;  %1194 = vmatpush.msra.mxu3 %v521_v42  ;;  %v537_v41 = vld [vmem:[#allocation7 + $0xe78] sm:$0xff] }
  0xde   :  { %1136 = vmatpush.msra.mxu0 %v471_v43  ;;  %1155 = vmatpush.msra.mxu1 %v488_v44  ;;  %v569_v42 = vld [vmem:[#allocation7 + $0xf78] sm:$0xff]  ;;  %v474_v43 = vld [vmem:[#allocation7 + $0xc80] sm:$0xff] }
  0xdf   :  { %1176 = vmatpush.msra.mxu2 %v503_v45  ;;  %1195 = vmatpush.msra.mxu3 %v520_v46  ;;  %v506_v44 = vld [vmem:[#allocation7 + $0xd80] sm:$0xff]  ;;  %v615_v45 = vperm.slane %v1501_v31, 1  ;;  %v617_v46 = vperm.slane %v1501_v31, 3 }
  0xe0   :  { %1137 = vmatpush.msra.mxu0 %v470_v18  ;;  %1156 = vmatpush.msra.mxu1 %v487_v47  ;;  %v536_v18 = vld [vmem:[#allocation7 + $0xe70] sm:$0xff]  ;;  %v553_v47 = vld [vmem:[#allocation7 + $0xef8] sm:$0xff] }
  0xe1   :  { %1177 = vmatpush.msra.mxu2 %v502_v48  ;;  %1196 = vmatpush.msra.mxu3 %v519_v49  ;;  %v568_v48 = vld [vmem:[#allocation7 + $0xf70] sm:$0xff]  ;;  %v585_v49 = vld [vmem:[#allocation7 + $0xff8] sm:$0xff] }
  0xe2   :  { %1138 = vmatpush.msra.mxu0 %v469_v50  ;;  %1157 = vmatpush.msra.mxu1 %v486_v51  ;;  %v535_v50 = vld [vmem:[#allocation7 + $0xe68] sm:$0xff]  ;;  %v552_v51 = vld [vmem:[#allocation7 + $0xef0] sm:$0xff] }
  0xe3   :  { %1178 = vmatpush.msra.mxu2 %v501_v52  ;;  %1197 = vmatpush.msra.mxu3 %v518_v53  ;;  %v567_v52 = vld [vmem:[#allocation7 + $0xf68] sm:$0xff]  ;;  %v584_v53 = vld [vmem:[#allocation7 + $0xff0] sm:$0xff] }
  0xe4   :  { %1139 = vmatpush.msra.mxu0 %v468_v54  ;;  %1158 = vmatpush.msra.mxu1 %v485_v55  ;;  %v534_v54 = vld [vmem:[#allocation7 + $0xe60] sm:$0xff]  ;;  %v551_v55 = vld [vmem:[#allocation7 + $0xee8] sm:$0xff] }
  0xe5   :  { %1179 = vmatpush.msra.mxu2 %v500_v56  ;;  %1198 = vmatpush.msra.mxu3 %v517_v57  ;;  %v566_v56 = vld [vmem:[#allocation7 + $0xf60] sm:$0xff]  ;;  %v583_v57 = vld [vmem:[#allocation7 + $0xfe8] sm:$0xff] }
  0xe6   :  { %1140 = vmatpush.msra.mxu0 %v467_v58  ;;  %1159 = vmatpush.msra.mxu1 %v484_v59  ;;  %v533_v58 = vld [vmem:[#allocation7 + $0xe58] sm:$0xff]  ;;  %v550_v59 = vld [vmem:[#allocation7 + $0xee0] sm:$0xff] }
  0xe7   :  { %1180 = vmatpush.msra.mxu2 %v499_v60  ;;  %1199 = vmatpush.msra.mxu3 %v516_v61  ;;  %v565_v60 = vld [vmem:[#allocation7 + $0xf58] sm:$0xff]  ;;  %v582_v61 = vld [vmem:[#allocation7 + $0xfe0] sm:$0xff] }
  0xe8   :  { %1141 = vmatpush.msra.mxu0 %v466_v62  ;;  %1160 = vmatpush.msra.mxu1 %v483_v63  ;;  %v532_v62 = vld [vmem:[#allocation7 + $0xe50] sm:$0xff]  ;;  %v549_v63 = vld [vmem:[#allocation7 + $0xed8] sm:$0xff] }
  0xe9   :  { %1181 = vmatpush.msra.mxu2 %v498_v0  ;;  %1200 = vmatpush.msra.mxu3 %v515_v1  ;;  %v564_v0 = vld [vmem:[#allocation7 + $0xf50] sm:$0xff]  ;;  %v581_v1 = vld [vmem:[#allocation7 + $0xfd8] sm:$0xff] }
  0xea   :  { %1142 = vmatpush.msra.mxu0 %v465_v2  ;;  %1161 = vmatpush.msra.mxu1 %v482_v3  ;;  %v531_v2 = vld [vmem:[#allocation7 + $0xe48] sm:$0xff]  ;;  %v548_v3 = vld [vmem:[#allocation7 + $0xed0] sm:$0xff] }
  0xeb   :  { %1182 = vmatpush.msra.mxu2 %v497_v4  ;;  %1201 = vmatpush.msra.mxu3 %v514_v6  ;;  %v563_v4 = vld [vmem:[#allocation7 + $0xf48] sm:$0xff]  ;;  %v580_v6 = vld [vmem:[#allocation7 + $0xfd0] sm:$0xff] }
  0xec   :  { %1143 = vmatpush.msra.mxu0 %v464_v7  ;;  %1162 = vmatpush.msra.mxu1 %v481_v8  ;;  %v530_v7 = vld [vmem:[#allocation7 + $0xe40] sm:$0xff]  ;;  %v547_v8 = vld [vmem:[#allocation7 + $0xec8] sm:$0xff] }
  0xed   :  { %1183 = vmatpush.msra.mxu2 %v496_v9  ;;  %1202 = vmatpush.msra.mxu3 %v513_v10  ;;  %v562_v9 = vld [vmem:[#allocation7 + $0xf40] sm:$0xff]  ;;  %v579_v10 = vld [vmem:[#allocation7 + $0xfc8] sm:$0xff] }
  0xee   :  { %1144 = vmatpush.msra.mxu0 %v463_v11  ;;  %1163 = vmatpush.msra.mxu1 %v480_v12  ;;  %v529_v11 = vld [vmem:[#allocation7 + $0xe38] sm:$0xff]  ;;  %v546_v12 = vld [vmem:[#allocation7 + $0xec0] sm:$0xff] }
  0xef   :  { %1184 = vmatpush.msra.mxu2 %v495_v15  ;;  %1203 = vmatpush.msra.mxu3 %v512_v16  ;;  %v528_v15 = vld [vmem:[#allocation7 + $0xe30] sm:$0xff]  ;;  %v545_v16 = vld [vmem:[#allocation7 + $0xeb8] sm:$0xff] }
  0xf0   :  { %1145 = vmatpush.msra.mxu0 %v462_v17  ;;  %1164 = vmatpush.msra.mxu1 %v479_v19  ;;  %v560_v17 = vld [vmem:[#allocation7 + $0xf30] sm:$0xff]  ;;  %v577_v19 = vld [vmem:[#allocation7 + $0xfb8] sm:$0xff] }
  0xf1   :  { %1185 = vmatpush.msra.mxu2 %v494_v20  ;;  %1204 = vmatpush.msra.mxu3 %v511_v21  ;;  %v527_v20 = vld [vmem:[#allocation7 + $0xe28] sm:$0xff]  ;;  %v544_v21 = vld [vmem:[#allocation7 + $0xeb0] sm:$0xff] }
  0xf2   :  { %1146 = vmatpush.msra.mxu0 %v461_v23  ;;  %1165 = vmatpush.msra.mxu1 %v478_v24  ;;  %v576_v23 = vld [vmem:[#allocation7 + $0xfb0] sm:$0xff]  ;;  %v526_v24 = vld [vmem:[#allocation7 + $0xe20] sm:$0xff] }
  0xf3   :  { %1186 = vmatpush.msra.mxu2 %v493_v25  ;;  %1205 = vmatpush.msra.mxu3 %v510_v26  ;;  %v543_v25 = vld [vmem:[#allocation7 + $0xea8] sm:$0xff]  ;;  %v558_v26 = vld [vmem:[#allocation7 + $0xf20] sm:$0xff] }
  0xf4   :  { %1147 = vmatpush.msra.mxu0 %v460_v27  ;;  %1166 = vmatpush.msra.mxu1 %v477_v28  ;;  %v575_v27 = vld [vmem:[#allocation7 + $0xfa8] sm:$0xff]  ;;  %v525_v28 = vld [vmem:[#allocation7 + $0xe18] sm:$0xff] }
  0xf5   :  { %1187 = vmatpush.msra.mxu2 %v492_v29  ;;  %1206 = vmatpush.msra.mxu3 %v509_v30  ;;  %v542_v29 = vld [vmem:[#allocation7 + $0xea0] sm:$0xff]  ;;  %v557_v30 = vld [vmem:[#allocation7 + $0xf18] sm:$0xff] }
  0xf6   :  { %1148 = vmatpush.msra.mxu0 %v459_v32  ;;  %1167 = vmatpush.msra.mxu1 %v476_v33  ;;  %v574_v32 = vld [vmem:[#allocation7 + $0xfa0] sm:$0xff]  ;;  %v524_v33 = vld [vmem:[#allocation7 + $0xe10] sm:$0xff] }
  0xf7   :  { %1188 = vmatpush.msra.mxu2 %v491_v34  ;;  %1207 = vmatpush.msra.mxu3 %v508_v5  ;;  %v541_v34 = vld [vmem:[#allocation7 + $0xe98] sm:$0xff]  ;;  %v556_v5 = vld [vmem:[#allocation7 + $0xf10] sm:$0xff] }
  0xf8   :  { %1149 = vmatpush.msra.mxu0 %v458_v35  ;;  %1168 = vmatpush.msra.mxu1 %v475_v36  ;;  %v573_v35 = vld [vmem:[#allocation7 + $0xf98] sm:$0xff]  ;;  %v523_v36 = vld [vmem:[#allocation7 + $0xe08] sm:$0xff] }
  0xf9   :  { %1189 = vmatpush.msra.mxu2 %v490_v37  ;;  %1208 = vmatpush.msra.mxu3 %v507_v38  ;;  %v540_v37 = vld [vmem:[#allocation7 + $0xe90] sm:$0xff]  ;;  %v555_v38 = vld [vmem:[#allocation7 + $0xf08] sm:$0xff] }
  0xfa   :  { %1150 = vmatmul.f32.vlgmr.msra.gmra.mxu0 %v614_v39  ;;  %1190 = vmatmul.f32.vlgmr.msra.gmra.mxu2 %v616_v40  ;;  %v572_v39 = vld [vmem:[#allocation7 + $0xf90] sm:$0xff]  ;;  %v522_v40 = vld [vmem:[#allocation7 + $0xe00] sm:$0xff] }
  0xfb   :  { %1214 = vmatpush.msrb.mxu0 %v537_v41  ;;  %1254 = vmatpush.msrb.mxu2 %v569_v42  ;;  %v539_v41 = vld [vmem:[#allocation7 + $0xe88] sm:$0xff]  ;;  %v554_v42 = vld [vmem:[#allocation7 + $0xf00] sm:$0xff] }
  0xfc   :  { %1169 = vmatpush.msra.mxu1 %v474_v43  ;;  %1209 = vmatpush.msra.mxu3 %v506_v44  ;;  %v571_v43 = vld [vmem:[#allocation7 + $0xf88] sm:$0xff]  ;;  %v618_v44 = vperm.slane %v1501_v31, 4 }
  0xfd   :  { %1170 = vmatmul.f32.vlgmr.msra.gmra.mxu1 %v615_v45  ;;  %1210 = vmatmul.f32.vlgmr.msra.gmra.mxu3 %v617_v46  ;;  %v620_v45 = vperm.slane %v1501_v31, 6  ;;  %v538_v46 = vld [vmem:[#allocation7 + $0xe80] sm:$0xff] }
  0xfe   :  { %1215 = vmatpush.msrb.mxu0 %v536_v18  ;;  %1234 = vmatpush.msrb.mxu1 %v553_v47  ;;  %v570_v18 = vld [vmem:[#allocation7 + $0xf80] sm:$0xff]  ;;  %v619_v47 = vperm.slane %v1501_v31, 5 }
  0xff   :  { %1255 = vmatpush.msrb.mxu2 %v568_v48  ;;  %1274 = vmatpush.msrb.mxu3 %v585_v49  ;;  %v621_v48 = vperm.slane %v1501_v31, 7  ;;  %v691_v49 = vpop.f32.mrf.mxu1 }
 0x100   :  { %1216 = vmatpush.msrb.mxu0 %v535_v50  ;;  %1235 = vmatpush.msrb.mxu1 %v552_v51  ;;  %v671_v50 = vpop.f32.mrf.mxu0 }
 0x101   :  { %1256 = vmatpush.msrb.mxu2 %v567_v52  ;;  %1275 = vmatpush.msrb.mxu3 %v584_v53  ;;  %v692_v51 = vadd.f32 %v691_v49, %v671_v50  ;;  %v711_v52 = vpop.f32.mrf.mxu2 }
 0x102   :  { %1217 = vmatpush.msrb.mxu0 %v534_v54  ;;  %1236 = vmatpush.msrb.mxu1 %v551_v55  ;;  %v731_v54 = vpop.f32.mrf.mxu3 }
 0x103   :  { %1257 = vmatpush.msrb.mxu2 %v566_v56  ;;  %1276 = vmatpush.msrb.mxu3 %v583_v57  ;;  %v712_v53 = vadd.f32 %v711_v52, %v692_v51 }
 0x104   :  { %1218 = vmatpush.msrb.mxu0 %v533_v58  ;;  %1237 = vmatpush.msrb.mxu1 %v550_v59 }
 0x105   :  { %1258 = vmatpush.msrb.mxu2 %v565_v60  ;;  %1277 = vmatpush.msrb.mxu3 %v582_v61  ;;  %v732_v55 = vadd.f32 %v731_v54, %v712_v53 }
 0x106   :  { %1219 = vmatpush.msrb.mxu0 %v532_v62  ;;  %1238 = vmatpush.msrb.mxu1 %v549_v63 }
 0x107   :  { %1259 = vmatpush.msrb.mxu2 %v564_v0  ;;  %1278 = vmatpush.msrb.mxu3 %v581_v1  ;;  %v771_v58 = vpop.f32.mrf.mxu1 }
 0x108   :  { %1220 = vmatpush.msrb.mxu0 %v531_v2  ;;  %1239 = vmatpush.msrb.mxu1 %v548_v3  ;;  %v751_v56 = vpop.f32.mrf.mxu0 }
 0x109   :  { %1260 = vmatpush.msrb.mxu2 %v563_v4  ;;  %1279 = vmatpush.msrb.mxu3 %v580_v6  ;;  %v752_v57 = vadd.f32 %v751_v56, %v732_v55  ;;  %v791_v31 = vpop.f32.mrf.mxu2 }
 0x10a   :  { %1221 = vmatpush.msrb.mxu0 %v530_v7  ;;  %1240 = vmatpush.msrb.mxu1 %v547_v8  ;;  %v811_v61 = vpop.f32.mrf.mxu3 }
 0x10b   :  { %1261 = vmatpush.msrb.mxu2 %v562_v9  ;;  %1280 = vmatpush.msrb.mxu3 %v579_v10  ;;  %v772_v59 = vadd.f32 %v771_v58, %v752_v57 }
 0x10c   :  { %1222 = vmatpush.msrb.mxu0 %v529_v11  ;;  %1241 = vmatpush.msrb.mxu1 %v546_v12 }
 0x10d   :  { %1262 = vmatpush.msrb.mxu2 %v561_v13  ;;  %1281 = vmatpush.msrb.mxu3 %v578_v14  ;;  %v792_v60 = vadd.f32 %v791_v31, %v772_v59 }
 0x10e   :  { %1223 = vmatpush.msrb.mxu0 %v528_v15  ;;  %1242 = vmatpush.msrb.mxu1 %v545_v16 }
 0x10f   :  { %1263 = vmatpush.msrb.mxu2 %v560_v17  ;;  %1282 = vmatpush.msrb.mxu3 %v577_v19  ;;  %v812_v63 = vadd.f32 %v811_v61, %v792_v60  ;;  %v851_v1 = vpop.f32.mrf.mxu1 }
 0x110   :  { %1224 = vmatpush.msrb.mxu0 %v527_v20  ;;  %1243 = vmatpush.msrb.mxu1 %v544_v21  ;;  %v831_v62 = vpop.f32.mrf.mxu0 }
 0x111   :  { %1264 = vmatpush.msrb.mxu2 %v559_v22  ;;  %1283 = vmatpush.msrb.mxu3 %v576_v23  ;;  %v832_v0 = vadd.f32 %v831_v62, %v812_v63  ;;  %v871_v2 = vpop.f32.mrf.mxu2 }
 0x112   :  { %1225 = vmatpush.msrb.mxu0 %v526_v24  ;;  %1244 = vmatpush.msrb.mxu1 %v543_v25  ;;  %v891_v6 = vpop.f32.mrf.mxu3 }
 0x113   :  { %1265 = vmatpush.msrb.mxu2 %v558_v26  ;;  %1284 = vmatpush.msrb.mxu3 %v575_v27  ;;  %v852_v3 = vadd.f32 %v851_v1, %v832_v0 }
 0x114   :  { %1226 = vmatpush.msrb.mxu0 %v525_v28  ;;  %1245 = vmatpush.msrb.mxu1 %v542_v29 }
 0x115   :  { %1266 = vmatpush.msrb.mxu2 %v557_v30  ;;  %1285 = vmatpush.msrb.mxu3 %v574_v32  ;;  %v872_v4 = vadd.f32 %v871_v2, %v852_v3 }
 0x116   :  { %1227 = vmatpush.msrb.mxu0 %v524_v33  ;;  %1246 = vmatpush.msrb.mxu1 %v541_v34 }
 0x117   :  { %1267 = vmatpush.msrb.mxu2 %v556_v5  ;;  %1286 = vmatpush.msrb.mxu3 %v573_v35  ;;  %v892_v8 = vadd.f32 %v891_v6, %v872_v4  ;;  %v931_v10 = vpop.f32.mrf.mxu1 }
 0x118   :  { %1228 = vmatpush.msrb.mxu0 %v523_v36  ;;  %1247 = vmatpush.msrb.mxu1 %v540_v37  ;;  %v911_v7 = vpop.f32.mrf.mxu0 }
 0x119   :  { %1268 = vmatpush.msrb.mxu2 %v555_v38  ;;  %1287 = vmatpush.msrb.mxu3 %v572_v39  ;;  %v912_v9 = vadd.f32 %v911_v7, %v892_v8  ;;  %v951_v11 = vpop.f32.mrf.mxu2 }
 0x11a   :  { %1229 = vmatpush.msrb.mxu0 %v522_v40  ;;  %1248 = vmatpush.msrb.mxu1 %v539_v41  ;;  %v971_v14 = vpop.f32.mrf.mxu3 }
 0x11b   :  { %1269 = vmatpush.msrb.mxu2 %v554_v42  ;;  %1288 = vmatpush.msrb.mxu3 %v571_v43  ;;  %v932_v12 = vadd.f32 %v931_v10, %v912_v9 }
 0x11c   :  { %1230 = vmatmul.f32.vlgmr.msrb.gmra.mxu0 %v618_v44  ;;  %1270 = vmatmul.f32.vlgmr.msrb.gmra.mxu2 %v620_v45 }
 0x11d   :  { %1249 = vmatpush.msrb.mxu1 %v538_v46  ;;  %1289 = vmatpush.msrb.mxu3 %v570_v18  ;;  %v952_v13 = vadd.f32 %v951_v11, %v932_v12 }
 0x11e   :  { %1250 = vmatmul.f32.vlgmr.msrb.gmra.mxu1 %v619_v47  ;;  %1290 = vmatmul.f32.vlgmr.msrb.gmra.mxu3 %v621_v48 }
 0x11f   :  { %v972_v16 = vadd.f32 %v971_v14, %v952_v13 }
 0x133   :  { %v991_v15 = vpop.f32.mrf.mxu0 }
 0x134   :  { %v992_v17 = vadd.f32 %v991_v15, %v972_v16 }
 0x136   :  { %v1011_v19 = vpop.f32.mrf.mxu1 }
 0x137   :  { %v1012_v21 = vadd.f32 %v1011_v19, %v992_v17 }
 0x139   :  { %v1031_v20 = vpop.f32.mrf.mxu2 }
 0x13a   :  { %v1032_v22 = vadd.f32 %v1031_v20, %v1012_v21 }
 0x13c   :  { %v1051_v23 = vpop.f32.mrf.mxu3 }
 0x13d   :  { %v1052_v25 = vadd.f32 %v1051_v23, %v1032_v22 }
 0x155   :  { %v1071_v24 = vpop.f32.mrf.mxu0 }
 0x156   :  { %v1072_v26 = vadd.f32 %v1071_v24, %v1052_v25 }
 0x158   :  { %v1091_v27 = vpop.f32.mrf.mxu1 }
 0x159   :  { %v1092_v29 = vadd.f32 %v1091_v27, %v1072_v26 }
 0x15b   :  { %v1111_v28 = vpop.f32.mrf.mxu2 }
 0x15c   :  { %v1112_v30 = vadd.f32 %v1111_v28, %v1092_v29 }
 0x15e   :  { %v1131_v32 = vpop.f32.mrf.mxu3 }
 0x15f   :  { %v1132_v34 = vadd.f32 %v1131_v32, %v1112_v30 }
 0x177   :  { %v1151_v33 = vpop.f32.mrf.mxu0 }
 0x178   :  { %v1152_v5 = vadd.f32 %v1151_v33, %v1132_v34 }
 0x17a   :  { %v1171_v35 = vpop.f32.mrf.mxu1 }
 0x17b   :  { %v1172_v37 = vadd.f32 %v1171_v35, %v1152_v5 }
 0x17d   :  { %v1191_v36 = vpop.f32.mrf.mxu2 }
 0x17e   :  { %v1192_v38 = vadd.f32 %v1191_v36, %v1172_v37 }
 0x180   :  { %v1211_v39 = vpop.f32.mrf.mxu3 }
 0x181   :  { %v1212_v40 = vadd.f32 %v1211_v39, %v1192_v38 }
 0x199   :  { %v1231_v41 = vpop.f32.mrf.mxu0 }
 0x19a   :  { %v1232_v42 = vadd.f32 %v1231_v41, %v1212_v40 }
 0x19b   :  { %v1251_v43 = vpop.f32.mrf.mxu1 }
 0x19c   :  { %v1252_v44 = vadd.f32 %v1251_v43, %v1232_v42 }
 0x19f   :  { %v1271_v45 = vpop.f32.mrf.mxu2 }
 0x1a0   :  { %v1272_v46 = vadd.f32 %v1271_v45, %v1252_v44 }
 0x1a1   :  { %v1291_v18 = vpop.f32.mrf.mxu3 }
 0x1a2   :  { %v1292_v47 = vadd.f32 %v1291_v18, %v1272_v46 }
 0x1a4   :  { %1332 = vrsqrt.f32 %v1292_v47  ;;  %vm1301_vm0 = vcmp.eq.f32.partialorder %v1292_v47, inf  ;;  %v1304_v55 = vand.u32 2147483648, %v1292_v47  ;;  %vm1303_vm1 = vcmp.eq.f32.partialorder %v1292_v47, 0.0 }
 0x1aa   :  { %v1333_v48 = vpop.eup %1332 }
 0x1ab   :  { %v1295_v49 = vmul.f32 %v1333_v48, %v1292_v47 }
 0x1ad   :  { %v1296_v50 = vmul.f32 %v1333_v48, %v1295_v49 }
 0x1af   :  { %v1297_v51 = vmul.f32 0.5, %v1296_v50 }
 0x1b1   :  { %v1298_v52 = vsub.f32 1.5, %v1297_v51 }
 0x1b3   :  { %v1299_v53 = vmul.f32 %v1333_v48, %v1298_v52 }
 0x1b5   :  { %v1300_v54 = vmul.f32 %v1299_v53, %v1292_v47 }
 0x1b7   :  { %v1302_v56 = vsel %vm1301_vm0, %v1292_v47, %v1300_v54 }
 0x1b8   :  { %v1305_v57 = vsel %vm1303_vm1, %v1304_v55, %v1302_v56 }
 0x1b9   :  { %v1306_v58 = vsub.f32 0.0, %v1305_v57 }
 0x1bb   :  { %1307 = vst [vmem:[#allocation8] sm:$0x1] %v1306_v58 }
 0x1bc   :  { %1318 = dma.vmem_to_hbm [thread:$0]  %s1314_s2, 16, %s1316_s30, [#allocation4]  }
 0x1bd   :  { %1434 = dma.done.wait [#allocation4], 16  }
 0x1be   :  { %1435 = vsyncadd [#allocation4], 4294967280 }
 0x1bf   :  { %1323 = vsyncpa [#allocation3], 1 }
 0x1c0   :  { %1324 = vsyncpa [#allocation6], 1 }
 0x1c1   :  { %1325 = vsyncpa [#allocation4], 1 }

</bundles_post_ra>
